<compile_context>
chip_gen: v7x
topology: tpu7x:2x2x1
jax: 0.10.0
libtpu: 0.0.40
codegen_flags: <defaults>
</compile_context>

<pallas_src>
from functools import partial

import numpy as np
import jax
import jax.numpy as jnp
from jax import lax
from jax.experimental import pallas as pl
from jax.experimental.pallas import tpu as pltpu


BP = 8  # batch padded to one full sublane tile inside the kernel


# ----------------------------------------------------------------------------
# Single fused kernel: Conv3x3(pad1)+BN+ReLU + MaxPool2x2 + trunk FC + head FC.
# ----------------------------------------------------------------------------
def fused_mtl_kernel(xeo_ref, crhs_ref, cbias_ref, w3_ref, fcb_ref,
                     hw_ref, hb_ref, o_ref):
    """Whole MTLModel forward (task='basic') in one kernel body.

    xeo_ref:  (2, 9, BP, 72)  f32  padded input, even/odd H rows split:
                              xeo[e, k, b, wp*Cin+ci] = x_pad[b, 2k+e, wp, ci]
    crhs_ref: (4, 72, 1024)   bf16 block-Toeplitz conv weight (BN scale folded),
                              rows = (wp, ci) of padded width, cols = (hp, wp2, sw, co)
    cbias_ref:(1, 1024)       f32  folded BN bias (+ conv bias), tiled over (q, sw)
    w3_ref:   (8, 256, 64)    bf16 trunk FC weight re-laid-out to (sh, sw*Cout, F)
    fcb_ref:  (1, 64)         f32
    hw_ref:   (64, 128)       f32  head weight, zero-padded to 128 lanes
    hb_ref:   (1, 128)        f32
    o_ref:    (BP, 128)       f32
    """
    bp = o_ref.shape[0]
    xeo = xeo_ref[...]                                    # (2, 9, BP, 72)

    # --- In-kernel patch gather (the only data-dependent thing is static) ------
    # Band for pooled row sh uses padded rows 2sh + di, di = 0..3; with the even/odd
    # split these are 4 *aligned* leading-dim slices (pure vreg selection, no relayout).
    taps = (xeo[0, 0:8], xeo[1, 0:8], xeo[0, 1:9], xeo[1, 1:9])   # 4 x (8, BP, 72)

    # --- Convolution (3x3, pad 1) with folded BN scale -------------------------
    # 4 accumulated band matmuls; the W-direction unfold lives in crhs (block-Toeplitz),
    # so the output carries all (pool tap q, pool column sw, channel c) on the lanes.
    n_lanes = crhs_ref.shape[2]                           # 1024 = 4 * 8 * Cout
    acc = jnp.zeros((8 * bp, n_lanes), jnp.float32)
    for di in range(4):
        lhs_di = taps[di].reshape(8 * bp, -1).astype(jnp.bfloat16)   # (64, 72)
        acc = acc + jnp.dot(lhs_di, crhs_ref[di],
                            preferred_element_type=jnp.float32)      # (64, 1024)

    # --- BatchNorm bias (+conv bias) + ReLU ------------------------------------
    y = jnp.maximum(acc + cbias_ref[...], 0.0)                        # (64, 1024)

    # --- MaxPool 2x2 stride 2: max over the four lane-aligned 256-wide q-chunks
    c4 = n_lanes // 4                                                  # 256
    p = jnp.maximum(jnp.maximum(y[:, 0 * c4:1 * c4], y[:, 1 * c4:2 * c4]),
                    jnp.maximum(y[:, 2 * c4:3 * c4], y[:, 3 * c4:4 * c4]))  # (64, 256)

    # --- Dropout node: identity at inference -----------------------------------

    # --- Trunk InnerProduct (feature) -------------------------------------------
    # Rows are (sh, b); split is sublane-tile aligned.  Contract (sw, c) = 256 per
    # pooled row sh (8 batched MXU pushes with K = one full MXU K-tile), sum over sh.
    shc = p.shape[0] // bp                                             # 8
    p3 = p.reshape(shc, bp, c4).astype(jnp.bfloat16)                   # (8, BP, 256)
    q3 = lax.dot_general(p3, w3_ref[...],
                         dimension_numbers=(((2,), (1,)), ((0,), (0,))),
                         preferred_element_type=jnp.float32)           # (8, BP, 64)
    feature = jnp.sum(q3, axis=0) + fcb_ref[...]                       # (BP, 64)

    # --- Task head ('basic') InnerProduct, lane-padded to 128 -------------------
    logits = jnp.dot(feature, hw_ref[...],
                     preferred_element_type=jnp.float32) + hb_ref[...]
    o_ref[...] = logits.astype(o_ref.dtype)


# ----------------------------------------------------------------------------
# Forward wrapper: NCHW input -> tiny relayout (pad + even/odd split) -> one call.
# ----------------------------------------------------------------------------
@partial(jax.jit, static_argnames=("ncls",))
def mtl_forward(x_nchw, kparams, *, ncls):
    b, cin, h, w = x_nchw.shape

    # NCHW -> NHWC, pad batch to BP and spatial by 1 for the 3x3 SAME conv.
    xp = jnp.pad(jnp.transpose(x_nchw, (0, 2, 3, 1)),
                 ((0, BP - b), (1, 1), (1, 1), (0, 0)))          # (BP, H+2, W+2, Cin)
    xr = xp.reshape(BP, h + 2, (w + 2) * cin)                    # (BP, 18, 72)
    # Even/odd padded-row split so the kernel's band gather is 4 aligned slices.
    xeo = jnp.transpose(xr.reshape(BP, (h + 2) // 2, 2, (w + 2) * cin),
                        (2, 1, 0, 3))                            # (2, 9, BP, 72)

    ncls_pad = kparams["head_w"].shape[1]
    vmem = pltpu.MemorySpace.VMEM
    out = pl.pallas_call(
        fused_mtl_kernel,
        out_shape=jax.ShapeDtypeStruct((BP, ncls_pad), jnp.float32),
        in_specs=[pl.BlockSpec(memory_space=vmem) for _ in range(7)],
        out_specs=pl.BlockSpec(memory_space=vmem),
    )(xeo, kparams["conv_rhs"], kparams["conv_bias"], kparams["w3"],
      kparams["fc_b"], kparams["head_w"], kparams["head_b"])
    return out[:b, :ncls]


# ----------------------------------------------------------------------------
# Parameters (synthetic, deterministic).
# ----------------------------------------------------------------------------
def make_params(key, cin=4, cout=32, hw=16, feat=64, ncls=10):
    ks = jax.random.split(key, 10)
    conv_w_oihw = 0.1 * jax.random.normal(ks[0], (cout, cin, 3, 3), jnp.float32)
    conv_b = 0.1 * jax.random.normal(ks[1], (cout,), jnp.float32)
    gamma = 1.0 + 0.1 * jax.random.normal(ks[2], (cout,), jnp.float32)
    beta = 0.1 * jax.random.normal(ks[3], (cout,), jnp.float32)
    run_mean = 0.1 * jax.random.normal(ks[4], (cout,), jnp.float32)
    run_var = jax.random.uniform(ks[5], (cout,), jnp.float32, 0.5, 1.5)

    k_in = cout * (hw // 2) * (hw // 2)
    fc_w = 0.05 * jax.random.normal(ks[6], (k_in, feat), jnp.float32)
    fc_b = 0.05 * jax.random.normal(ks[7], (feat,), jnp.float32)
    head_w = 0.05 * jax.random.normal(ks[8], (feat, ncls), jnp.float32)
    head_b = 0.05 * jax.random.normal(ks[9], (ncls,), jnp.float32)

    return {
        "conv_w_oihw": conv_w_oihw, "conv_b": conv_b,
        "gamma": gamma, "beta": beta, "run_mean": run_mean, "run_var": run_var,
        "eps": 1e-5,
        "fc_w": fc_w, "fc_b": fc_b, "head_w": head_w, "head_b": head_b,
        "cin": cin, "cout": cout, "hw": hw, "feat": feat, "ncls": ncls,
    }


# ----------------------------------------------------------------------------
# One-time host-side kernel re-layouts (weights folded / block-structured / bf16).
# ----------------------------------------------------------------------------
def prepare_kernel_params(p, ncls_pad=128):
    cin, cout, hw, feat = p["cin"], p["cout"], p["hw"], p["feat"]
    swc = hw // 2                    # pooled columns (8)
    shc = hw // 2                    # pooled rows    (8)
    wpad = hw + 2                    # padded width   (18)

    # Fold BN scale into the conv weight (exact in f32, then one bf16 rounding).
    bn_scale = np.asarray(p["gamma"]) / np.sqrt(np.asarray(p["run_var"]) + p["eps"])
    bn_bias = (np.asarray(p["beta"])
               + (np.asarray(p["conv_b"]) - np.asarray(p["run_mean"])) * bn_scale)
    w_hwio = np.transpose(np.asarray(p["conv_w_oihw"]), (2, 3, 1, 0))     # (3,3,Cin,Cout)
    w_sc = w_hwio * bn_scale[None, None, None, :]

    # Block-Toeplitz "band" conv weight: for band-row offset di and padded-width
    # position wp, column (hp, wp2, sw, co) gets W[di-hp, wp-2*sw-wp2] when valid.
    rhs = np.zeros((4, wpad, cin, 2, 2, swc, cout), np.float32)
    for hp in range(2):
        for wp2 in range(2):
            for sw in range(swc):
                for kh in range(3):
                    for kw in range(3):
                        rhs[hp + kh, 2 * sw + wp2 + kw, :, hp, wp2, sw, :] = w_sc[kh, kw]
    conv_rhs = jnp.asarray(rhs.reshape(4, wpad * cin, 4 * swc * cout), jnp.bfloat16)

    conv_bias = jnp.asarray(np.tile(bn_bias, 4 * swc)[None, :], jnp.float32)  # (1, 1024)

    # Trunk FC: PyTorch flattens pooled NCHW as idx = c*(shc*swc) + sh*swc + sw.
    # Re-layout to (sh, sw*Cout + c, F) so the kernel contracts (sw, c) per sh.
    fc_w = np.asarray(p["fc_w"]).reshape(cout, shc, swc, feat)
    w3 = np.transpose(fc_w, (1, 2, 0, 3)).reshape(shc, swc * cout, feat)
    w3 = jnp.asarray(w3, jnp.bfloat16)

    # Head zero-padded to 128 lanes (lane-dense final matmul and store).
    head_w = np.zeros((feat, ncls_pad), np.float32)
    head_w[:, :p["head_w"].shape[1]] = np.asarray(p["head_w"])
    head_b = np.zeros((1, ncls_pad), np.float32)
    head_b[0, :p["head_b"].shape[0]] = np.asarray(p["head_b"])

    return {
        "conv_rhs": conv_rhs, "conv_bias": conv_bias,
        "w3": w3, "fc_b": jnp.asarray(p["fc_b"])[None, :],
        "head_w": jnp.asarray(head_w), "head_b": jnp.asarray(head_b),
    }


# ----------------------------------------------------------------------------
# Pure-JAX (XLA) f32 reference mirroring the PyTorch forward, NCHW throughout.
# ----------------------------------------------------------------------------
def reference_forward(x_nchw, p):
    conv = lax.conv_general_dilated(
        x_nchw, p["conv_w_oihw"], window_strides=(1, 1), padding="SAME",
        dimension_numbers=("NCHW", "OIHW", "NCHW"))
    conv = conv + p["conv_b"].reshape(1, -1, 1, 1)
    scale = (p["gamma"] / jnp.sqrt(p["run_var"] + p["eps"])).reshape(1, -1, 1, 1)
    y = jnp.maximum((conv - p["run_mean"].reshape(1, -1, 1, 1)) * scale
                    + p["beta"].reshape(1, -1, 1, 1), 0.0)
    b, c, h, w = y.shape
    pooled = y.reshape(b, c, h // 2, 2, w // 2, 2).max(axis=(3, 5))
    flat = pooled.reshape(b, -1)                                      # NCHW flatten
    feature = flat @ p["fc_w"] + p["fc_b"]                            # Dropout = identity
    return feature @ p["head_w"] + p["head_b"]


if __name__ == "__main__":
    key = jax.random.PRNGKey(0)
    k_x, k_p = jax.random.split(key)

    B, C, H, W = 2, 4, 16, 16            # PyTorch NCHW input
    x = jax.random.normal(k_x, (B, C, H, W), jnp.float32)
    params = make_params(k_p, cin=C, hw=H)
    kparams = prepare_kernel_params(params)

    out = jax.block_until_ready(mtl_forward(x, kparams, ncls=params["ncls"]))
    ref = reference_forward(x, params)

    assert out.shape == (B, params["ncls"])
    # Kernel runs activations + weights in bf16 on the matmul paths (f32 accumulation);
    # expected deviation from the pure-f32 reference is ~4e-3 sigma on the logits.
    err = float(jnp.max(jnp.abs(out - ref)))
    assert jnp.allclose(out, ref, atol=2e-2, rtol=2e-2), f"mismatch vs reference: {err}"

    print("KERNEL_OK")
</pallas_src>

<mosaic_0001>
module attributes {stable_mosaic.version = 11 : i64} {
  func.func @fused_mtl_kernel(%arg0: memref<2x9x8x72xf32, #tpu.memory_space<vmem>>, %arg1: memref<4x72x1024xbf16, #tpu.memory_space<vmem>>, %arg2: memref<1x1024xf32, #tpu.memory_space<vmem>>, %arg3: memref<8x256x64xbf16, #tpu.memory_space<vmem>>, %arg4: memref<1x64xf32, #tpu.memory_space<vmem>>, %arg5: memref<64x128xf32, #tpu.memory_space<vmem>>, %arg6: memref<1x128xf32, #tpu.memory_space<vmem>>, %arg7: memref<8x128xf32, #tpu.memory_space<vmem>>) attributes {dimension_semantics = [], scalar_prefetch = 0 : i64, scratch_operands = 0 : i64, tpu.core_type = #tpu.core_type<tc>} {
    %c0 = arith.constant 0 : index
    %c0_0 = arith.constant 0 : index
    %c0_1 = arith.constant 0 : index
    %c0_2 = arith.constant 0 : index
    %0 = vector.load %arg0[%c0, %c0_0, %c0_1, %c0_2] : memref<2x9x8x72xf32, #tpu.memory_space<vmem>>, vector<2x9x8x72xf32>
    %1 = vector.extract_strided_slice %0 {offsets = [0, 0, 0, 0], sizes = [1, 8, 8, 72], strides = [1, 1, 1, 1]} : vector<2x9x8x72xf32> to vector<1x8x8x72xf32>
    %2 = vector.shape_cast %1 : vector<1x8x8x72xf32> to vector<8x8x72xf32>
    %3 = vector.extract_strided_slice %0 {offsets = [1, 0, 0, 0], sizes = [1, 8, 8, 72], strides = [1, 1, 1, 1]} : vector<2x9x8x72xf32> to vector<1x8x8x72xf32>
    %4 = vector.shape_cast %3 : vector<1x8x8x72xf32> to vector<8x8x72xf32>
    %5 = vector.extract_strided_slice %0 {offsets = [0, 1, 0, 0], sizes = [1, 8, 8, 72], strides = [1, 1, 1, 1]} : vector<2x9x8x72xf32> to vector<1x8x8x72xf32>
    %6 = vector.shape_cast %5 : vector<1x8x8x72xf32> to vector<8x8x72xf32>
    %7 = vector.extract_strided_slice %0 {offsets = [1, 1, 0, 0], sizes = [1, 8, 8, 72], strides = [1, 1, 1, 1]} : vector<2x9x8x72xf32> to vector<1x8x8x72xf32>
    %8 = vector.shape_cast %7 : vector<1x8x8x72xf32> to vector<8x8x72xf32>
    %cst = arith.constant 0.000000e+00 : f32
    %9 = vector.broadcast %cst : f32 to vector<64x1024xf32>
    %10 = vector.shape_cast %2 : vector<8x8x72xf32> to vector<64x72xf32>
    %11 = arith.truncf %10 : vector<64x72xf32> to vector<64x72xbf16>
    %c0_3 = arith.constant 0 : index
    %c0_4 = arith.constant 0 : index
    %c0_5 = arith.constant 0 : index
    %12 = vector.load %arg1[%c0_3, %c0_4, %c0_5] : memref<4x72x1024xbf16, #tpu.memory_space<vmem>>, vector<1x72x1024xbf16>
    %13 = vector.shape_cast %12 : vector<1x72x1024xbf16> to vector<72x1024xbf16>
    %cst_6 = arith.constant dense<0.000000e+00> : vector<64x1024xf32>
    %14 = tpu.matmul %11, %13, %cst_6 {dimension_numbers = #tpu.dot_dimension_numbers<[1], [0], [0], [1], [0, 0, 1, 1], [], []>} : vector<64x72xbf16>, vector<72x1024xbf16>, vector<64x1024xf32> -> vector<64x1024xf32>
    %15 = arith.addf %9, %14 : vector<64x1024xf32>
    %16 = vector.shape_cast %4 : vector<8x8x72xf32> to vector<64x72xf32>
    %17 = arith.truncf %16 : vector<64x72xf32> to vector<64x72xbf16>
    %c1 = arith.constant 1 : index
    %c0_7 = arith.constant 0 : index
    %c0_8 = arith.constant 0 : index
    %18 = vector.load %arg1[%c1, %c0_7, %c0_8] : memref<4x72x1024xbf16, #tpu.memory_space<vmem>>, vector<1x72x1024xbf16>
    %19 = vector.shape_cast %18 : vector<1x72x1024xbf16> to vector<72x1024xbf16>
    %cst_9 = arith.constant dense<0.000000e+00> : vector<64x1024xf32>
    %20 = tpu.matmul %17, %19, %cst_9 {dimension_numbers = #tpu.dot_dimension_numbers<[1], [0], [0], [1], [0, 0, 1, 1], [], []>} : vector<64x72xbf16>, vector<72x1024xbf16>, vector<64x1024xf32> -> vector<64x1024xf32>
    %21 = arith.addf %15, %20 : vector<64x1024xf32>
    %22 = vector.shape_cast %6 : vector<8x8x72xf32> to vector<64x72xf32>
    %23 = arith.truncf %22 : vector<64x72xf32> to vector<64x72xbf16>
    %c2 = arith.constant 2 : index
    %c0_10 = arith.constant 0 : index
    %c0_11 = arith.constant 0 : index
    %24 = vector.load %arg1[%c2, %c0_10, %c0_11] : memref<4x72x1024xbf16, #tpu.memory_space<vmem>>, vector<1x72x1024xbf16>
    %25 = vector.shape_cast %24 : vector<1x72x1024xbf16> to vector<72x1024xbf16>
    %cst_12 = arith.constant dense<0.000000e+00> : vector<64x1024xf32>
    %26 = tpu.matmul %23, %25, %cst_12 {dimension_numbers = #tpu.dot_dimension_numbers<[1], [0], [0], [1], [0, 0, 1, 1], [], []>} : vector<64x72xbf16>, vector<72x1024xbf16>, vector<64x1024xf32> -> vector<64x1024xf32>
    %27 = arith.addf %21, %26 : vector<64x1024xf32>
    %28 = vector.shape_cast %8 : vector<8x8x72xf32> to vector<64x72xf32>
    %29 = arith.truncf %28 : vector<64x72xf32> to vector<64x72xbf16>
    %c3 = arith.constant 3 : index
    %c0_13 = arith.constant 0 : index
    %c0_14 = arith.constant 0 : index
    %30 = vector.load %arg1[%c3, %c0_13, %c0_14] : memref<4x72x1024xbf16, #tpu.memory_space<vmem>>, vector<1x72x1024xbf16>
    %31 = vector.shape_cast %30 : vector<1x72x1024xbf16> to vector<72x1024xbf16>
    %cst_15 = arith.constant dense<0.000000e+00> : vector<64x1024xf32>
    %32 = tpu.matmul %29, %31, %cst_15 {dimension_numbers = #tpu.dot_dimension_numbers<[1], [0], [0], [1], [0, 0, 1, 1], [], []>} : vector<64x72xbf16>, vector<72x1024xbf16>, vector<64x1024xf32> -> vector<64x1024xf32>
    %33 = arith.addf %27, %32 : vector<64x1024xf32>
    %c0_16 = arith.constant 0 : index
    %c0_17 = arith.constant 0 : index
    %34 = vector.load %arg2[%c0_16, %c0_17] : memref<1x1024xf32, #tpu.memory_space<vmem>>, vector<1x1024xf32>
    %35 = vector.broadcast %34 : vector<1x1024xf32> to vector<64x1024xf32>
    %36 = arith.addf %33, %35 : vector<64x1024xf32>
    %cst_18 = arith.constant 0.000000e+00 : f32
    %37 = vector.broadcast %cst_18 : f32 to vector<64x1024xf32>
    %38 = arith.maximumf %36, %37 : vector<64x1024xf32>
    %39 = vector.extract_strided_slice %38 {offsets = [0, 0], sizes = [64, 256], strides = [1, 1]} : vector<64x1024xf32> to vector<64x256xf32>
    %40 = vector.extract_strided_slice %38 {offsets = [0, 256], sizes = [64, 256], strides = [1, 1]} : vector<64x1024xf32> to vector<64x256xf32>
    %41 = arith.maximumf %39, %40 : vector<64x256xf32>
    %42 = vector.extract_strided_slice %38 {offsets = [0, 512], sizes = [64, 256], strides = [1, 1]} : vector<64x1024xf32> to vector<64x256xf32>
    %43 = vector.extract_strided_slice %38 {offsets = [0, 768], sizes = [64, 256], strides = [1, 1]} : vector<64x1024xf32> to vector<64x256xf32>
    %44 = arith.maximumf %42, %43 : vector<64x256xf32>
    %45 = arith.maximumf %41, %44 : vector<64x256xf32>
    %46 = vector.shape_cast %45 : vector<64x256xf32> to vector<8x8x256xf32>
    %47 = arith.truncf %46 : vector<8x8x256xf32> to vector<8x8x256xbf16>
    %c0_19 = arith.constant 0 : index
    %c0_20 = arith.constant 0 : index
    %c0_21 = arith.constant 0 : index
    %48 = vector.load %arg3[%c0_19, %c0_20, %c0_21] : memref<8x256x64xbf16, #tpu.memory_space<vmem>>, vector<8x256x64xbf16>
    %cst_22 = arith.constant dense<0.000000e+00> : vector<8x8x64xf32>
    %49 = tpu.matmul %47, %48, %cst_22 {dimension_numbers = #tpu.dot_dimension_numbers<[2], [1], [1], [2], [0, 0, 0, 1, 1, 2], [0], [0]>} : vector<8x8x256xbf16>, vector<8x256x64xbf16>, vector<8x8x64xf32> -> vector<8x8x64xf32>
    %cst_23 = arith.constant dense<0.000000e+00> : vector<8x64xf32>
    %50 = vector.multi_reduction <add>, %49, %cst_23 [0] : vector<8x8x64xf32> to vector<8x64xf32>
    %c0_24 = arith.constant 0 : index
    %c0_25 = arith.constant 0 : index
    %51 = vector.load %arg4[%c0_24, %c0_25] : memref<1x64xf32, #tpu.memory_space<vmem>>, vector<1x64xf32>
    %52 = vector.broadcast %51 : vector<1x64xf32> to vector<8x64xf32>
    %53 = arith.addf %50, %52 : vector<8x64xf32>
    %c0_26 = arith.constant 0 : index
    %c0_27 = arith.constant 0 : index
    %54 = vector.load %arg5[%c0_26, %c0_27] : memref<64x128xf32, #tpu.memory_space<vmem>>, vector<64x128xf32>
    %cst_28 = arith.constant dense<0.000000e+00> : vector<8x128xf32>
    %55 = tpu.matmul %53, %54, %cst_28 {dimension_numbers = #tpu.dot_dimension_numbers<[1], [0], [0], [1], [0, 0, 1, 1], [], []>} : vector<8x64xf32>, vector<64x128xf32>, vector<8x128xf32> -> vector<8x128xf32>
    %c0_29 = arith.constant 0 : index
    %c0_30 = arith.constant 0 : index
    %56 = vector.load %arg6[%c0_29, %c0_30] : memref<1x128xf32, #tpu.memory_space<vmem>>, vector<1x128xf32>
    %57 = vector.broadcast %56 : vector<1x128xf32> to vector<8x128xf32>
    %58 = arith.addf %55, %57 : vector<8x128xf32>
    %c0_31 = arith.constant 0 : index
    %c0_32 = arith.constant 0 : index
    %59 = vector.load %arg7[%c0_31, %c0_32] : memref<8x128xf32, #tpu.memory_space<vmem>>, vector<8x128xf32>
    tpu.vector_store %arg7[%c0_31, %c0_32], %58 {strides = array<i32>} : memref<8x128xf32, #tpu.memory_space<vmem>>, vector<8x128xf32>,
    return
  }
}

</mosaic_0001>

<bundles_post_ra>
// kernel: mtl_forward.1
= control target key start
LH: loop header
LB: loop body
LE: loop exit
PB: predicated region body
PF: predicated region fallthrough
CT: control target
= control target key end

     0   :  { %v5116_v3 = vmov 0   ;;  %vm319_vm0 = vcmask 1043456   ;;  %vm306_vm1 = vcmask 588800   ;;  %vm5118_vm2 = vmmov 0   ;;  %s6545_s1 = inlined_call_operand.vmem [shape: bf16[4,72,1024], index: 1, kind: input, shape index: {}]   ;;  %s6546_s0 = inlined_call_operand.vmem [shape: f32[2,9,8,72], index: 0, kind: input, shape index: {}]   ;;  %s6547_s3 = inlined_call_operand.vmem [shape: bf16[8,256,64], index: 3, kind: input, shape index: {}]   ;;  %s6548_s2 = inlined_call_operand.vmem [shape: f32[1,1024], index: 2, kind: input, shape index: {}]   ;;  %s6549_s5 = inlined_call_operand.vmem [shape: f32[64,128], index: 5, kind: input, shape index: {}]   ;;  %s6550_s4 = inlined_call_operand.vmem [shape: f32[1,64], index: 4, kind: input, shape index: {}]   ;;  %s6551_s6 = inlined_call_operand.vmem [shape: f32[1,128], index: 6, kind: input, shape index: {}]   ;;  %s6552_s7 = inlined_call_operand.vmem [shape: f32[8,128], index: 7, kind: output, shape index: {}]  }
   0x1   :  { %v4065_v0 = vld [vmem:[%s6545_s1 + $0x120] sm:$0xff]  ;;  %v4066_v2 = vld [vmem:[%s6545_s1 + $0x128] sm:$0xff]  ;;  %376 = vmatprep.mubr.bf16.mxu0 %v5116_v3  ;;  %449 = vmatprep.mubr.bf16.mxu1 %v5116_v3  ;;  %v37_v30 = vld [vmem:[%s6546_s0 + $0x50] sm:$0xff]  ;;  %vm3948_vm3 = vcmask 523264  }
   0x2   :  { %v4069_v1 = vld [vmem:[%s6545_s1 + $0x140] sm:$0xff]  ;;  %v4070_v5 = vld [vmem:[%s6545_s1 + $0x148] sm:$0xff]  ;;  %v38_v31 = vld [vmem:[%s6546_s0 + $0x58] sm:$0xff] }
   0x3   :  { %v4102_v4 = vcombine.high %v4065_v0, %v4069_v1  ;;  %v4101_v6 = vcombine.low %v4065_v0, %v4069_v1  ;;  %v4073_v7 = vld [vmem:[%s6545_s1 + $0x160] sm:$0xff]  ;;  %v4104_v9 = vcombine.high %v4066_v2, %v4070_v5  ;;  %v4103_v10 = vcombine.low %v4066_v2, %v4070_v5  ;;  %v4074_v12 = vld [vmem:[%s6545_s1 + $0x168] sm:$0xff]  ;;  %v4067_v42 = vld [vmem:[%s6545_s1 + $0x130] sm:$0xff] }
   0x4   :  { %v4077_v8 = vld [vmem:[%s6545_s1 + $0x180] sm:$0xff]  ;;  %v4078_v13 = vld [vmem:[%s6545_s1 + $0x188] sm:$0xff]  ;;  %v5219_v34 = vpack.c.bf16 %v38_v31, %v37_v30  ;;  %v4071_v43 = vld [vmem:[%s6545_s1 + $0x150] sm:$0xff] }
   0x5   :  { %v4110_v11 = vcombine.high %v4073_v7, %v4077_v8  ;;  %v4081_v14 = vld [vmem:[%s6545_s1 + $0x1a0] sm:$0xff]  ;;  %344 = vmatprep.subr.bf16.mxu0 %v4102_v4  ;;  %v4112_v15 = vcombine.high %v4074_v12, %v4078_v13  ;;  %v4082_v17 = vld [vmem:[%s6545_s1 + $0x1a8] sm:$0xff]  ;;  %417 = vmatprep.subr.bf16.mxu1 %v4104_v9  ;;  %v4109_v19 = vcombine.low %v4073_v7, %v4077_v8  ;;  %v4068_v44 = vld [vmem:[%s6545_s1 + $0x138] sm:$0xff] }
   0x6   :  { %v4085_v16 = vld [vmem:[%s6545_s1 + $0x1c0] sm:$0xff]  ;;  %v4086_v18 = vld [vmem:[%s6545_s1 + $0x1c8] sm:$0xff]  ;;  %345 = vmatpush1.bf16.msra.mxu0 %v4101_v6  ;;  %418 = vmatpush1.bf16.msra.mxu1 %v4103_v10  ;;  %v4111_v20 = vcombine.low %v4074_v12, %v4078_v13  ;;  %v4072_v45 = vld [vmem:[%s6545_s1 + $0x158] sm:$0xff]  ;;  %v4106_v48 = vcombine.high %v4067_v42, %v4071_v43  ;;  %v4105_v54 = vcombine.low %v4067_v42, %v4071_v43 }
   0x7   :  { %346 = vmatprep.subr.bf16.mxu0 %v4110_v11  ;;  %v4118_v21 = vcombine.high %v4081_v14, %v4085_v16  ;;  %419 = vmatprep.subr.bf16.mxu1 %v4112_v15  ;;  %v4120_v22 = vcombine.high %v4082_v17, %v4086_v18  ;;  %v4089_v23 = vld [vmem:[%s6545_s1 + $0x1e0] sm:$0xff]  ;;  %v4090_v25 = vld [vmem:[%s6545_s1 + $0x1e8] sm:$0xff]  ;;  %v4117_v27 = vcombine.low %v4081_v14, %v4085_v16  ;;  %v4075_v52 = vld [vmem:[%s6545_s1 + $0x170] sm:$0xff] }
   0x8   :  { %v4093_v24 = vld [vmem:[%s6545_s1 + $0x200] sm:$0xff]  ;;  %v4094_v26 = vld [vmem:[%s6545_s1 + $0x208] sm:$0xff]  ;;  %v4119_v28 = vcombine.low %v4082_v17, %v4086_v18  ;;  %v4108_v50 = vcombine.high %v4068_v44, %v4072_v45  ;;  %v4079_v53 = vld [vmem:[%s6545_s1 + $0x190] sm:$0xff]  ;;  %v4107_v57 = vcombine.low %v4068_v44, %v4072_v45 }
   0x9   :  { %v4126_v29 = vcombine.high %v4089_v23, %v4093_v24  ;;  %v4128_v32 = vcombine.high %v4090_v25, %v4094_v26  ;;  %v4097_v33 = vld [vmem:[%s6545_s1 + $0x220] sm:$0xff]  ;;  %v4098_v35 = vld [vmem:[%s6545_s1 + $0x228] sm:$0xff]  ;;  %v4125_v36 = vcombine.low %v4089_v23, %v4093_v24  ;;  %v4127_v37 = vcombine.low %v4090_v25, %v4094_v26  ;;  %v4076_v55 = vld [vmem:[%s6545_s1 + $0x178] sm:$0xff] }
   0xa   :  { %347 = vmatpush1.bf16.msra.mxu0 %v4109_v19  ;;  %420 = vmatpush1.bf16.msra.mxu1 %v4111_v20  ;;  %v4134_v38 = vcombine.high %v4097_v33, %v4097_v33  ;;  %v4133_v39 = vcombine.low %v4097_v33, %v4097_v33  ;;  %v4136_v40 = vcombine.high %v4098_v35, %v4098_v35  ;;  %v36_v46 = vld [vmem:[%s6546_s0 + $0x48] sm:$0xff]  ;;  %v4080_v56 = vld [vmem:[%s6545_s1 + $0x198] sm:$0xff]  ;;  %v4083_v59 = vld [vmem:[%s6545_s1 + $0x1b0] sm:$0xff] }
   0xb   :  { %348 = vmatprep.subr.bf16.mxu0 %v4118_v21  ;;  %421 = vmatprep.subr.bf16.mxu1 %v4120_v22  ;;  %v4135_v41 = vcombine.low %v4098_v35, %v4098_v35  ;;  %v5243_v51 = vpack.c.bf16 %v37_v30, %v36_v46  ;;  %v4114_v58 = vcombine.high %v4075_v52, %v4079_v53  ;;  %v4087_v60 = vld [vmem:[%s6545_s1 + $0x1d0] sm:$0xff]  ;;  %v4084_v62 = vld [vmem:[%s6545_s1 + $0x1b8] sm:$0xff]  ;;  %v5276_v1 = vld [vmem:[%s6546_s0 + $0x60] sm:$0xff] }
   0xc   :  { %v321_v47 = vsel %vm319_vm0, %v4133_v39, 0  ;;  %v4116_v61 = vcombine.high %v4076_v55, %v4080_v56  ;;  %v4088_v63 = vld [vmem:[%s6545_s1 + $0x1d8] sm:$0xff]  ;;  %v4113_v0 = vcombine.low %v4075_v52, %v4079_v53  ;;  %v4115_v2 = vcombine.low %v4076_v55, %v4080_v56  ;;  %v4091_v7 = vld [vmem:[%s6545_s1 + $0x1f0] sm:$0xff]  ;;  %v5308_v17 = vld [vmem:[%s6546_s0 + $0x68] sm:$0xff] }
   0xd   :  { %v327_v49 = vsel %vm319_vm0, %v4135_v41, 0  ;;  %v4122_v4 = vcombine.high %v4083_v59, %v4087_v60  ;;  %v4124_v5 = vcombine.high %v4084_v62, %v4088_v63  ;;  %v5281_v6 = vpack.c.bf16 %v5276_v1, %v38_v31  ;;  %v4095_v8 = vld [vmem:[%s6545_s1 + $0x210] sm:$0xff]  ;;  %v4092_v10 = vld [vmem:[%s6545_s1 + $0x1f8] sm:$0xff]  ;;  %v49_v26 = vld [vmem:[%s6545_s1] sm:$0xff] }
   0xe   :  { %349 = vmatpush1.bf16.msra.mxu0 %v4117_v27  ;;  %422 = vmatpush1.bf16.msra.mxu1 %v4119_v28  ;;  %v4121_v9 = vcombine.low %v4083_v59, %v4087_v60  ;;  %v4096_v11 = vld [vmem:[%s6545_s1 + $0x218] sm:$0xff]  ;;  %v4123_v12 = vcombine.low %v4084_v62, %v4088_v63  ;;  %v4130_v13 = vcombine.high %v4091_v7, %v4095_v8  ;;  %v4099_v14 = vld [vmem:[%s6545_s1 + $0x230] sm:$0xff]  ;;  %v53_v27 = vld [vmem:[%s6545_s1 + $0x20] sm:$0xff] }
   0xf   :  { %350 = vmatprep.subr.bf16.mxu0 %v4126_v29  ;;  %423 = vmatprep.subr.bf16.mxu1 %v4128_v32  ;;  %v4132_v15 = vcombine.high %v4092_v10, %v4096_v11  ;;  %v4100_v16 = vld [vmem:[%s6545_s1 + $0x238] sm:$0xff]  ;;  %v5313_v18 = vld [vmem:[%s6546_s0 + $0x70] sm:$0xff]  ;;  %v4129_v19 = vcombine.low %v4091_v7, %v4095_v8  ;;  %v4131_v20 = vcombine.low %v4092_v10, %v4096_v11  ;;  %v50_v28 = vld [vmem:[%s6545_s1 + $0x8] sm:$0xff] }
  0x10   :  { %v4138_v21 = vcombine.high %v4099_v14, %v4099_v14  ;;  %v4140_v22 = vcombine.high %v4100_v16, %v4100_v16  ;;  %v4137_v23 = vcombine.low %v4099_v14, %v4099_v14  ;;  %v5319_v24 = vpack.c.bf16 %v5313_v18, %v5308_v17  ;;  %v54_v29 = vld [vmem:[%s6545_s1 + $0x28] sm:$0xff]  ;;  %v5345_v35 = vld [vmem:[%s6546_s0 + $0x78] sm:$0xff]  ;;  %v61_v39 = vld [vmem:[%s6545_s1 + $0x60] sm:$0xff] }
  0x11   :  { %v4139_v25 = vcombine.low %v4100_v16, %v4100_v16  ;;  %v4162_v31 = vcombine.high %v49_v26, %v53_v27  ;;  %v4164_v33 = vcombine.high %v50_v28, %v54_v29  ;;  %v58_v41 = vld [vmem:[%s6545_s1 + $0x48] sm:$0xff]  ;;  %v4163_v43 = vcombine.low %v50_v28, %v54_v29  ;;  %v65_v45 = vld [vmem:[%s6545_s1 + $0x80] sm:$0xff]  ;;  %v52_v10 = vld [vmem:[%s6545_s1 + $0x18] sm:$0xff] }
  0x12   :  { %351 = vmatpush1.bf16.msra.mxu0 %v4125_v36  ;;  %424 = vmatpush1.bf16.msra.mxu1 %v4127_v37  ;;  %v333_v30 = vsel %vm319_vm0, %v4137_v23, 0  ;;  %v5350_v36 = vld [vmem:[%s6546_s0 + $0x80] sm:$0xff]  ;;  %v62_v42 = vld [vmem:[%s6545_s1 + $0x68] sm:$0xff]  ;;  %v56_v11 = vld [vmem:[%s6545_s1 + $0x38] sm:$0xff] }
  0x13   :  { %4141 = vmatprep.subr.msk.bf16.mxu0 %vm319_vm0, %v4134_v38  ;;  %4146 = vmatprep.subr.msk.bf16.mxu1 %vm319_vm0, %v4136_v40  ;;  %v339_v32 = vsel %vm319_vm0, %v4139_v25, 0  ;;  %v5355_v37 = vpack.c.bf16 %v5350_v36, %v5345_v35  ;;  %v57_v38 = vld [vmem:[%s6545_s1 + $0x40] sm:$0xff]  ;;  %v4161_v40 = vcombine.low %v49_v26, %v53_v27  ;;  %v4171_v52 = vcombine.low %v58_v41, %v62_v42  ;;  %v82_v63 = vld [vmem:[%s6545_s1 + $0x108] sm:$0xff]  ;;  %v64_v25 = vld [vmem:[%s6545_s1 + $0x78] sm:$0xff] }
  0x14   :  { %v4170_v44 = vcombine.high %v57_v38, %v61_v39  ;;  %v69_v46 = vld [vmem:[%s6545_s1 + $0xa0] sm:$0xff]  ;;  %v4195_v8 = vcombine.low %v82_v63, %v82_v63  ;;  %v4167_v26 = vcombine.low %v52_v10, %v56_v11  ;;  %v67_v28 = vld [vmem:[%s6545_s1 + $0x90] sm:$0xff] }
  0x15   :  { %v4178_v53 = vcombine.high %v65_v45, %v69_v46  ;;  %v73_v55 = vld [vmem:[%s6545_s1 + $0xc0] sm:$0xff]  ;;  %v4177_v56 = vcombine.low %v65_v45, %v69_v46  ;;  %v71_v29 = vld [vmem:[%s6545_s1 + $0xb0] sm:$0xff]  ;;  %v76_v46 = vld [vmem:[%s6545_s1 + $0xd8] sm:$0xff] }
  0x16   :  { %353 = vmatpush1.bf16.msra.mxu0 %v321_v47  ;;  %426 = vmatpush1.bf16.msra.mxu1 %v327_v49  ;;  %v4172_v47 = vcombine.high %v58_v41, %v62_v42  ;;  %v70_v49 = vld [vmem:[%s6545_s1 + $0xa8] sm:$0xff]  ;;  %v835_v14 = vsel %vm319_vm0, %v4195_v8, 0  ;;  %v27_v16 = vld [vmem:[%s6546_s0] sm:$0xff]  ;;  %v4181_v45 = vcombine.low %v67_v28, %v71_v29 }
  0x17   :  { %490 = vmatprep.subr.bf16.mxu0 %v4106_v48  ;;  %563 = vmatprep.subr.bf16.mxu1 %v4108_v50  ;;  %v66_v48 = vld [vmem:[%s6545_s1 + $0x88] sm:$0xff]  ;;  %v4169_v50 = vcombine.low %v57_v38, %v61_v39  ;;  %v5492_v38 = vld [vmem:[%s6546_s0 + $0x18] sm:$0xff] }
  0x18   :  { %v4179_v59 = vcombine.low %v66_v48, %v70_v49 }
  0x19   :  { %4142 = vmatmul.mubr.msk.bf16.vlgmr.msra.gmra.mrb[0].mxu0 %vm306_vm1, %v5243_v51  ;;  %4147 = vmatmul.mubr.msk.bf16.vlgmr.msra.gmra.mrb[0].mxu1 %vm306_vm1, %v5243_v51 }
  0x1a   :  { %491 = vmatpush1.bf16.msra.mxu0 %v4105_v54  ;;  %564 = vmatpush1.bf16.msra.mxu1 %v4107_v57  ;;  %v4180_v54 = vcombine.high %v66_v48, %v70_v49  ;;  %v74_v57 = vld [vmem:[%s6545_s1 + $0xc8] sm:$0xff] }
  0x1b   :  { %386 = vmatprep.mubr.bf16.mxu0 %v5116_v3  ;;  %459 = vmatprep.mubr.bf16.mxu1 %v5116_v3 }
  0x1c   :  { %492 = vmatprep.subr.bf16.mxu0 %v4114_v58  ;;  %565 = vmatprep.subr.bf16.mxu1 %v4116_v61  ;;  %v78_v58 = vld [vmem:[%s6545_s1 + $0xe8] sm:$0xff]  ;;  %v81_v61 = vld [vmem:[%s6545_s1 + $0x100] sm:$0xff] }
  0x1d   :  { %v4188_v62 = vcombine.high %v74_v57, %v78_v58  ;;  %v4193_v7 = vcombine.low %v81_v61, %v81_v61 }
  0x1e   :  { %493 = vmatpush1.bf16.msra.mxu0 %v4113_v0  ;;  %566 = vmatpush1.bf16.msra.mxu1 %v4115_v2  ;;  %v4187_v2 = vcombine.low %v74_v57, %v78_v58 }
  0x1f   :  { %494 = vmatprep.subr.bf16.mxu0 %v4122_v4  ;;  %567 = vmatprep.subr.bf16.mxu1 %v4124_v5  ;;  %v4194_v4 = vcombine.high %v81_v61, %v81_v61  ;;  %v4196_v5 = vcombine.high %v82_v63, %v82_v63  ;;  %v4225_v63 = vld [vmem:[%s6545_s1 + $0x260] sm:$0xff] }
  0x21   :  { %4143 = vmatmul.mubr.msk.bf16.gmra.mrb[4].mxu0 %vm306_vm1, %v5281_v6  ;;  %4148 = vmatmul.mubr.msk.bf16.gmra.mrb[4].mxu1 %vm306_vm1, %v5281_v6 }
  0x22   :  { %495 = vmatpush1.bf16.msra.mxu0 %v4121_v9  ;;  %568 = vmatpush1.bf16.msra.mxu1 %v4123_v12  ;;  %v51_v9 = vld [vmem:[%s6545_s1 + $0x10] sm:$0xff]  ;;  %v829_v12 = vsel %vm319_vm0, %v4193_v7, 0 }
  0x23   :  { %396 = vmatprep.mubr.bf16.mxu0 %v5116_v3  ;;  %469 = vmatprep.mubr.bf16.mxu1 %v5116_v3 }
  0x24   :  { %496 = vmatprep.subr.bf16.mxu0 %v4130_v13  ;;  %569 = vmatprep.subr.bf16.mxu1 %v4132_v15  ;;  %v4168_v15 = vcombine.high %v52_v10, %v56_v11  ;;  %v4229_v11 = vld [vmem:[%s6545_s1 + $0x280] sm:$0xff] }
  0x26   :  { %497 = vmatpush1.bf16.msra.mxu0 %v4129_v19  ;;  %570 = vmatpush1.bf16.msra.mxu1 %v4131_v20  ;;  %v5450_v19 = vld [vmem:[%s6546_s0 + $0x8] sm:$0xff] }
  0x27   :  { %4151 = vmatprep.subr.msk.bf16.mxu0 %vm319_vm0, %v4138_v21  ;;  %4156 = vmatprep.subr.msk.bf16.mxu1 %vm319_vm0, %v4140_v22  ;;  %v5454_v20 = vpack.c.bf16 %v5450_v19, %v27_v16  ;;  %v59_v21 = vld [vmem:[%s6545_s1 + $0x50] sm:$0xff] }
  0x28   :  { %v63_v22 = vld [vmem:[%s6545_s1 + $0x70] sm:$0xff] }
  0x29   :  { %4144 = vmatmul.mubr.msk.bf16.gmra.mrb[8].mxu0 %vm306_vm1, %v5319_v24  ;;  %4149 = vmatmul.mubr.msk.bf16.gmra.mrb[8].mxu1 %vm306_vm1, %v5319_v24  ;;  %v4174_v27 = vcombine.high %v59_v21, %v63_v22 }
  0x2a   :  { %406 = vmatprep.mubr.bf16.mxu0 %v5116_v3  ;;  %479 = vmatprep.mubr.bf16.mxu1 %v5116_v3 }
  0x2b   :  { %499 = vmatpush1.bf16.msra.mxu0 %v333_v30  ;;  %572 = vmatpush1.bf16.msra.mxu1 %v339_v32  ;;  %v72_v32 = vld [vmem:[%s6545_s1 + $0xb8] sm:$0xff] }
  0x2c   :  { %852 = vmatprep.subr.bf16.mxu0 %v4162_v31  ;;  %925 = vmatprep.subr.bf16.mxu1 %v4164_v33  ;;  %v68_v31 = vld [vmem:[%s6545_s1 + $0x98] sm:$0xff]  ;;  %v4173_v33 = vcombine.low %v59_v21, %v63_v22  ;;  %v4237_v22 = vld [vmem:[%s6545_s1 + $0x2c0] sm:$0xff] }
  0x2d   :  { %v4184_v41 = vcombine.high %v68_v31, %v72_v32  ;;  %v4183_v48 = vcombine.low %v68_v31, %v72_v32  ;;  %v4245_v31 = vld [vmem:[%s6545_s1 + $0x300] sm:$0xff] }
  0x31   :  { %4145 = vmatmul.mubr.msk.bf16.gmra.mrb[12].mxu0 %vm306_vm1, %v5355_v37  ;;  %4150 = vmatmul.mubr.msk.bf16.gmra.mrb[12].mxu1 %vm306_vm1, %v5355_v37 }
  0x32   :  { %522 = vmatprep.mubr.bf16.mxu0 %v5116_v3  ;;  %595 = vmatprep.mubr.bf16.mxu1 %v5116_v3 }
  0x39   :  { %4152 = vmatmul.mubr.msk.bf16.vlgmr.msra.gmra.mrb[16].mxu0 %vm306_vm1, %v5243_v51  ;;  %4157 = vmatmul.mubr.msk.bf16.vlgmr.msra.gmra.mrb[16].mxu1 %vm306_vm1, %v5243_v51  ;;  %v77_v51 = vld [vmem:[%s6545_s1 + $0xe0] sm:$0xff] }
  0x3a   :  { %853 = vmatpush1.bf16.msra.mxu0 %v4161_v40  ;;  %926 = vmatpush1.bf16.msra.mxu1 %v4163_v43  ;;  %v4186_v60 = vcombine.high %v73_v55, %v77_v51  ;;  %v4185_v0 = vcombine.low %v73_v55, %v77_v51  ;;  %v4182_v40 = vcombine.high %v67_v28, %v71_v29  ;;  %v75_v43 = vld [vmem:[%s6545_s1 + $0xd0] sm:$0xff]  ;;  %v5530_v55 = vld [vmem:[%s6546_s0 + $0x28] sm:$0xff] }
  0x3b   :  { %532 = vmatprep.mubr.bf16.mxu0 %v5116_v3  ;;  %605 = vmatprep.mubr.bf16.mxu1 %v5116_v3 }
  0x3c   :  { %854 = vmatprep.subr.bf16.mxu0 %v4170_v44  ;;  %927 = vmatprep.subr.bf16.mxu1 %v4172_v47  ;;  %v79_v44 = vld [vmem:[%s6545_s1 + $0xf0] sm:$0xff]  ;;  %v80_v47 = vld [vmem:[%s6545_s1 + $0xf8] sm:$0xff] }
  0x3d   :  { %v4190_v49 = vcombine.high %v75_v43, %v79_v44  ;;  %v4189_v51 = vcombine.low %v75_v43, %v79_v44  ;;  %v4253_v43 = vld [vmem:[%s6545_s1 + $0x340] sm:$0xff] }
  0x3e   :  { %855 = vmatpush1.bf16.msra.mxu0 %v4169_v50  ;;  %928 = vmatpush1.bf16.msra.mxu1 %v4171_v52  ;;  %v83_v50 = vld [vmem:[%s6545_s1 + $0x110] sm:$0xff]  ;;  %v4192_v52 = vcombine.high %v76_v46, %v80_v47 }
  0x3f   :  { %856 = vmatprep.subr.bf16.mxu0 %v4178_v53  ;;  %929 = vmatprep.subr.bf16.mxu1 %v4180_v54  ;;  %v84_v53 = vld [vmem:[%s6545_s1 + $0x118] sm:$0xff]  ;;  %v5525_v54 = vld [vmem:[%s6546_s0 + $0x20] sm:$0xff]  ;;  %v4198_v57 = vcombine.high %v83_v50, %v83_v50 }
  0x40   :  { %v4200_v58 = vcombine.high %v84_v53, %v84_v53  ;;  %v4199_v61 = vcombine.low %v84_v53, %v84_v53  ;;  %v4223_v53 = vld [vmem:[%s6545_s1 + $0x250] sm:$0xff] }
  0x41   :  { %4153 = vmatmul.mubr.msk.bf16.gmra.mrb[20].mxu0 %vm306_vm1, %v5281_v6  ;;  %4158 = vmatmul.mubr.msk.bf16.gmra.mrb[20].mxu1 %vm306_vm1, %v5281_v6  ;;  %v55_v6 = vld [vmem:[%s6545_s1 + $0x30] sm:$0xff] }
  0x42   :  { %857 = vmatpush1.bf16.msra.mxu0 %v4177_v56  ;;  %930 = vmatpush1.bf16.msra.mxu1 %v4179_v59  ;;  %v4166_v13 = vcombine.high %v51_v9, %v55_v6  ;;  %v4165_v23 = vcombine.low %v51_v9, %v55_v6  ;;  %v4191_v56 = vcombine.low %v76_v46, %v80_v47  ;;  %v847_v7 = vsel %vm319_vm0, %v4199_v61, 0  ;;  %v5562_v9 = vld [vmem:[%s6546_s0 + $0x30] sm:$0xff]  ;;  %v5567_v6 = vld [vmem:[%s6546_s0 + $0x38] sm:$0xff] }
  0x43   :  { %542 = vmatprep.mubr.bf16.mxu0 %v5116_v3  ;;  %615 = vmatprep.mubr.bf16.mxu1 %v5116_v3  ;;  %v4197_v59 = vcombine.low %v83_v50, %v83_v50  ;;  %v5572_v10 = vpack.c.bf16 %v5567_v6, %v5562_v9  ;;  %v4289_v50 = vcombine.low %v4253_v43, %v4253_v43 }
  0x44   :  { %858 = vmatprep.subr.bf16.mxu0 %v4186_v60  ;;  %931 = vmatprep.subr.bf16.mxu1 %v4188_v62  ;;  %v5536_v60 = vpack.c.bf16 %v5530_v55, %v5525_v54  ;;  %v4221_v62 = vld [vmem:[%s6545_s1 + $0x240] sm:$0xff] }
  0x46   :  { %859 = vmatpush1.bf16.msra.mxu0 %v4185_v0  ;;  %932 = vmatpush1.bf16.msra.mxu1 %v4187_v2  ;;  %v4222_v0 = vld [vmem:[%s6545_s1 + $0x248] sm:$0xff] }
  0x47   :  { %4201 = vmatprep.subr.msk.bf16.mxu0 %vm319_vm0, %v4194_v4  ;;  %4206 = vmatprep.subr.msk.bf16.mxu1 %vm319_vm0, %v4196_v5  ;;  %v4226_v2 = vld [vmem:[%s6545_s1 + $0x268] sm:$0xff]  ;;  %v841_v4 = vsel %vm319_vm0, %v4197_v59, 0  ;;  %v4258_v5 = vcombine.high %v4221_v62, %v4225_v63 }
  0x48   :  { %v4260_v8 = vcombine.high %v4222_v0, %v4226_v2  ;;  %v4259_v16 = vcombine.low %v4222_v0, %v4226_v2  ;;  %v4232_v2 = vld [vmem:[%s6545_s1 + $0x298] sm:$0xff] }
  0x49   :  { %4154 = vmatmul.mubr.msk.bf16.gmra.mrb[24].mxu0 %vm306_vm1, %v5319_v24  ;;  %4159 = vmatmul.mubr.msk.bf16.gmra.mrb[24].mxu1 %vm306_vm1, %v5319_v24  ;;  %v60_v24 = vld [vmem:[%s6545_s1 + $0x58] sm:$0xff] }
  0x4a   :  { %552 = vmatprep.mubr.bf16.mxu0 %v5116_v3  ;;  %625 = vmatprep.mubr.bf16.mxu1 %v5116_v3  ;;  %v4176_v30 = vcombine.high %v60_v24, %v64_v25  ;;  %v4175_v39 = vcombine.low %v60_v24, %v64_v25  ;;  %v4238_v25 = vld [vmem:[%s6545_s1 + $0x2c8] sm:$0xff] }
  0x4b   :  { %861 = vmatpush1.bf16.msra.mxu0 %v829_v12  ;;  %934 = vmatpush1.bf16.msra.mxu1 %v835_v14  ;;  %v4233_v12 = vld [vmem:[%s6545_s1 + $0x2a0] sm:$0xff]  ;;  %v4230_v14 = vld [vmem:[%s6545_s1 + $0x288] sm:$0xff] }
  0x4c   :  { %998 = vmatprep.subr.bf16.mxu0 %v4166_v13  ;;  %1071 = vmatprep.subr.bf16.mxu1 %v4168_v15  ;;  %v4257_v13 = vcombine.low %v4221_v62, %v4225_v63  ;;  %v4234_v15 = vld [vmem:[%s6545_s1 + $0x2a8] sm:$0xff]  ;;  %v4266_v21 = vcombine.high %v4229_v11, %v4233_v12  ;;  %v4231_v62 = vld [vmem:[%s6545_s1 + $0x290] sm:$0xff] }
  0x4d   :  { %v4268_v24 = vcombine.high %v4230_v14, %v4234_v15  ;;  %v4267_v28 = vcombine.low %v4230_v14, %v4234_v15  ;;  %v4235_v63 = vld [vmem:[%s6545_s1 + $0x2b0] sm:$0xff] }
  0x51   :  { %4155 = vmatmul.mubr.msk.bf16.gmra.mrb[28].mxu0 %vm306_vm1, %v5355_v37  ;;  %4160 = vmatmul.mubr.msk.bf16.gmra.mrb[28].mxu1 %vm306_vm1, %v5355_v37  ;;  %v5487_v37 = vld [vmem:[%s6546_s0 + $0x10] sm:$0xff] }
  0x52   :  { %884 = vmatprep.mubr.bf16.mxu0 %v5116_v3  ;;  %957 = vmatprep.mubr.bf16.mxu1 %v5116_v3  ;;  %v5498_v42 = vpack.c.bf16 %v5492_v38, %v5487_v37 }
  0x59   :  { %4202 = vmatmul.mubr.msk.bf16.vlgmr.msra.gmra.mrb[0].mxu0 %vm306_vm1, %v5454_v20  ;;  %4207 = vmatmul.mubr.msk.bf16.vlgmr.msra.gmra.mrb[0].mxu1 %vm306_vm1, %v5454_v20 }
  0x5a   :  { %999 = vmatpush1.bf16.msra.mxu0 %v4165_v23  ;;  %1072 = vmatpush1.bf16.msra.mxu1 %v4167_v26  ;;  %v4241_v23 = vld [vmem:[%s6545_s1 + $0x2e0] sm:$0xff]  ;;  %v4242_v26 = vld [vmem:[%s6545_s1 + $0x2e8] sm:$0xff] }
  0x5b   :  { %894 = vmatprep.mubr.bf16.mxu0 %v5116_v3  ;;  %967 = vmatprep.mubr.bf16.mxu1 %v5116_v3  ;;  %v4274_v29 = vcombine.high %v4237_v22, %v4241_v23  ;;  %v4273_v32 = vcombine.low %v4237_v22, %v4241_v23  ;;  %v4251_v22 = vld [vmem:[%s6545_s1 + $0x330] sm:$0xff] }
  0x5c   :  { %1000 = vmatprep.subr.bf16.mxu0 %v4174_v27  ;;  %1073 = vmatprep.subr.bf16.mxu1 %v4176_v30  ;;  %v4265_v27 = vcombine.low %v4229_v11, %v4233_v12  ;;  %v4276_v30 = vcombine.high %v4238_v25, %v4242_v26  ;;  %v4244_v11 = vld [vmem:[%s6545_s1 + $0x2f8] sm:$0xff]  ;;  %v4269_v12 = vcombine.low %v4231_v62, %v4235_v63 }
  0x5e   :  { %1001 = vmatpush1.bf16.msra.mxu0 %v4173_v33  ;;  %1074 = vmatpush1.bf16.msra.mxu1 %v4175_v39  ;;  %v4246_v33 = vld [vmem:[%s6545_s1 + $0x308] sm:$0xff] }
  0x5f   :  { %1002 = vmatprep.subr.bf16.mxu0 %v4182_v40  ;;  %1075 = vmatprep.subr.bf16.mxu1 %v4184_v41  ;;  %v4250_v39 = vld [vmem:[%s6545_s1 + $0x328] sm:$0xff]  ;;  %v4275_v40 = vcombine.low %v4238_v25, %v4242_v26  ;;  %v4252_v25 = vld [vmem:[%s6545_s1 + $0x338] sm:$0xff]  ;;  %v4255_v26 = vld [vmem:[%s6545_s1 + $0x350] sm:$0xff] }
  0x60   :  { %v4284_v44 = vcombine.high %v4246_v33, %v4250_v39  ;;  %v4283_v47 = vcombine.low %v4246_v33, %v4250_v39  ;;  %v5726_v33 = vpack.c.bf16 %v5562_v9, %v5530_v55  ;;  %v4322_v55 = vld [vmem:[%s6545_s1 + $0x388] sm:$0xff] }
  0x61   :  { %4203 = vmatmul.mubr.msk.bf16.gmra.mrb[4].mxu0 %vm306_vm1, %v5498_v42  ;;  %4208 = vmatmul.mubr.msk.bf16.gmra.mrb[4].mxu1 %vm306_vm1, %v5498_v42 }
  0x62   :  { %1003 = vmatpush1.bf16.msra.mxu0 %v4181_v45  ;;  %1076 = vmatpush1.bf16.msra.mxu1 %v4183_v48  ;;  %v4254_v45 = vld [vmem:[%s6545_s1 + $0x348] sm:$0xff]  ;;  %v4290_v48 = vcombine.high %v4253_v43, %v4253_v43 }
  0x63   :  { %904 = vmatprep.mubr.bf16.mxu0 %v5116_v3  ;;  %977 = vmatprep.mubr.bf16.mxu1 %v5116_v3  ;;  %v4318_v43 = vld [vmem:[%s6545_s1 + $0x368] sm:$0xff] }
  0x64   :  { %1004 = vmatprep.subr.bf16.mxu0 %v4190_v49  ;;  %1077 = vmatprep.subr.bf16.mxu1 %v4192_v52  ;;  %v4292_v49 = vcombine.high %v4254_v45, %v4254_v45  ;;  %v4291_v52 = vcombine.low %v4254_v45, %v4254_v45 }
  0x66   :  { %1005 = vmatpush1.bf16.msra.mxu0 %v4189_v51  ;;  %1078 = vmatpush1.bf16.msra.mxu1 %v4191_v56  ;;  %v4224_v51 = vld [vmem:[%s6545_s1 + $0x258] sm:$0xff]  ;;  %v1384_v59 = vsel %vm319_vm0, %v4291_v52, 0  ;;  %v4326_v52 = vld [vmem:[%s6545_s1 + $0x3a8] sm:$0xff] }
  0x67   :  { %4211 = vmatprep.subr.msk.bf16.mxu0 %vm319_vm0, %v4198_v57  ;;  %4216 = vmatprep.subr.msk.bf16.mxu1 %vm319_vm0, %v4200_v58  ;;  %v4228_v56 = vld [vmem:[%s6545_s1 + $0x278] sm:$0xff]  ;;  %v1378_v57 = vsel %vm319_vm0, %v4289_v50, 0 }
  0x68   :  { %v4264_v61 = vcombine.high %v4224_v51, %v4228_v56 }
  0x69   :  { %4204 = vmatmul.mubr.msk.bf16.gmra.mrb[8].mxu0 %vm306_vm1, %v5536_v60  ;;  %4209 = vmatmul.mubr.msk.bf16.gmra.mrb[8].mxu1 %vm306_vm1, %v5536_v60 }
  0x6a   :  { %914 = vmatprep.mubr.bf16.mxu0 %v5116_v3  ;;  %987 = vmatprep.mubr.bf16.mxu1 %v5116_v3 }
  0x6b   :  { %1007 = vmatpush1.bf16.msra.mxu0 %v841_v4  ;;  %1080 = vmatpush1.bf16.msra.mxu1 %v847_v7  ;;  %v4236_v4 = vld [vmem:[%s6545_s1 + $0x2b8] sm:$0xff]  ;;  %v4243_v7 = vld [vmem:[%s6545_s1 + $0x2f0] sm:$0xff] }
  0x6c   :  { %1401 = vmatprep.subr.bf16.mxu0 %v4258_v5  ;;  %1474 = vmatprep.subr.bf16.mxu1 %v4260_v8  ;;  %v4263_v5 = vcombine.low %v4224_v51, %v4228_v56  ;;  %v4272_v8 = vcombine.high %v4232_v2, %v4236_v4  ;;  %v4333_v56 = vld [vmem:[%s6545_s1 + $0x3e0] sm:$0xff] }
  0x71   :  { %4205 = vmatmul.mubr.msk.bf16.gmra.mrb[12].mxu0 %vm306_vm1, %v5572_v10  ;;  %4210 = vmatmul.mubr.msk.bf16.gmra.mrb[12].mxu1 %vm306_vm1, %v5572_v10 }
  0x72   :  { %1030 = vmatprep.mubr.bf16.mxu0 %v5116_v3  ;;  %1103 = vmatprep.mubr.bf16.mxu1 %v5116_v3 }
  0x79   :  { %4212 = vmatmul.mubr.msk.bf16.vlgmr.msra.gmra.mrb[16].mxu0 %vm306_vm1, %v5454_v20  ;;  %4217 = vmatmul.mubr.msk.bf16.vlgmr.msra.gmra.mrb[16].mxu1 %vm306_vm1, %v5454_v20  ;;  %v4249_v20 = vld [vmem:[%s6545_s1 + $0x320] sm:$0xff] }
  0x7a   :  { %1402 = vmatpush1.bf16.msra.mxu0 %v4257_v13  ;;  %1475 = vmatpush1.bf16.msra.mxu1 %v4259_v16  ;;  %v4282_v41 = vcombine.high %v4245_v31, %v4249_v20  ;;  %v4281_v46 = vcombine.low %v4245_v31, %v4249_v20  ;;  %v4271_v13 = vcombine.low %v4232_v2, %v4236_v4  ;;  %v4341_v4 = vld [vmem:[%s6545_s1 + $0x420] sm:$0xff] }
  0x7b   :  { %1040 = vmatprep.mubr.bf16.mxu0 %v5116_v3  ;;  %1113 = vmatprep.mubr.bf16.mxu1 %v5116_v3  ;;  %v5698_v16 = vpack.c.bf16 %v5525_v54, %v5492_v38  ;;  %v4294_v31 = vcombine.high %v4255_v26, %v4255_v26 }
  0x7c   :  { %1403 = vmatprep.subr.bf16.mxu0 %v4266_v21  ;;  %1476 = vmatprep.subr.bf16.mxu1 %v4268_v24  ;;  %v4247_v21 = vld [vmem:[%s6545_s1 + $0x310] sm:$0xff]  ;;  %v4248_v24 = vld [vmem:[%s6545_s1 + $0x318] sm:$0xff] }
  0x7d   :  { %v4286_v54 = vcombine.high %v4247_v21, %v4251_v22 }
  0x7e   :  { %1404 = vmatpush1.bf16.msra.mxu0 %v4265_v27  ;;  %1477 = vmatpush1.bf16.msra.mxu1 %v4267_v28  ;;  %v4288_v27 = vcombine.high %v4248_v24, %v4252_v25  ;;  %v4256_v28 = vld [vmem:[%s6545_s1 + $0x358] sm:$0xff] }
  0x7f   :  { %1405 = vmatprep.subr.bf16.mxu0 %v4274_v29  ;;  %1478 = vmatprep.subr.bf16.mxu1 %v4276_v30  ;;  %v4285_v29 = vcombine.low %v4247_v21, %v4251_v22  ;;  %v4287_v30 = vcombine.low %v4248_v24, %v4252_v25  ;;  %v4296_v20 = vcombine.high %v4256_v28, %v4256_v28  ;;  %v4319_v24 = vld [vmem:[%s6545_s1 + $0x370] sm:$0xff]  ;;  %v4320_v25 = vld [vmem:[%s6545_s1 + $0x378] sm:$0xff] }
  0x80   :  { %v4295_v39 = vcombine.low %v4256_v28, %v4256_v28 }
  0x81   :  { %4213 = vmatmul.mubr.msk.bf16.gmra.mrb[20].mxu0 %vm306_vm1, %v5498_v42  ;;  %4218 = vmatmul.mubr.msk.bf16.gmra.mrb[20].mxu1 %vm306_vm1, %v5498_v42  ;;  %v4227_v42 = vld [vmem:[%s6545_s1 + $0x270] sm:$0xff] }
  0x82   :  { %1406 = vmatpush1.bf16.msra.mxu0 %v4273_v32  ;;  %1479 = vmatpush1.bf16.msra.mxu1 %v4275_v40  ;;  %v4262_v58 = vcombine.high %v4223_v53, %v4227_v42  ;;  %v4261_v0 = vcombine.low %v4223_v53, %v4227_v42  ;;  %v4293_v32 = vcombine.low %v4255_v26, %v4255_v26  ;;  %v4317_v40 = vld [vmem:[%s6545_s1 + $0x360] sm:$0xff]  ;;  %v1396_v45 = vsel %vm319_vm0, %v4295_v39, 0  ;;  %v4330_v53 = vld [vmem:[%s6545_s1 + $0x3c8] sm:$0xff] }
  0x83   :  { %1050 = vmatprep.mubr.bf16.mxu0 %v5116_v3  ;;  %1123 = vmatprep.mubr.bf16.mxu1 %v5116_v3  ;;  %v4355_v42 = vcombine.low %v4318_v43, %v4322_v55 }
  0x84   :  { %1407 = vmatprep.subr.bf16.mxu0 %v4282_v41  ;;  %1480 = vmatprep.subr.bf16.mxu1 %v4284_v44  ;;  %v4321_v41 = vld [vmem:[%s6545_s1 + $0x380] sm:$0xff]  ;;  %v1390_v9 = vsel %vm319_vm0, %v4293_v32, 0  ;;  %v4332_v32 = vld [vmem:[%s6545_s1 + $0x3d8] sm:$0xff] }
  0x85   :  { %v4354_v44 = vcombine.high %v4317_v40, %v4321_v41  ;;  %v4353_v50 = vcombine.low %v4317_v40, %v4321_v41  ;;  %v4335_v40 = vld [vmem:[%s6545_s1 + $0x3f0] sm:$0xff] }
  0x86   :  { %1408 = vmatpush1.bf16.msra.mxu0 %v4281_v46  ;;  %1481 = vmatpush1.bf16.msra.mxu1 %v4283_v47  ;;  %v4356_v46 = vcombine.high %v4318_v43, %v4322_v55  ;;  %v35_v47 = vld [vmem:[%s6546_s0 + $0x40] sm:$0xff]  ;;  %v4339_v41 = vld [vmem:[%s6545_s1 + $0x410] sm:$0xff]  ;;  %v4336_v55 = vld [vmem:[%s6545_s1 + $0x3f8] sm:$0xff] }
  0x87   :  { %4297 = vmatprep.subr.msk.bf16.mxu0 %vm319_vm0, %v4290_v48  ;;  %4302 = vmatprep.subr.msk.bf16.mxu1 %vm319_vm0, %v4292_v49  ;;  %v5754_v48 = vpack.c.bf16 %v35_v47, %v5567_v6  ;;  %v4325_v49 = vld [vmem:[%s6545_s1 + $0x3a0] sm:$0xff] }
  0x88   :  { %v4329_v6 = vld [vmem:[%s6545_s1 + $0x3c0] sm:$0xff] }
  0x89   :  { %4214 = vmatmul.mubr.msk.bf16.gmra.mrb[24].mxu0 %vm306_vm1, %v5536_v60  ;;  %4219 = vmatmul.mubr.msk.bf16.gmra.mrb[24].mxu1 %vm306_vm1, %v5536_v60  ;;  %v5664_v60 = vpack.c.bf16 %v5487_v37, %v5450_v19  ;;  %v4270_v19 = vcombine.high %v4231_v62, %v4235_v63  ;;  %v4239_v37 = vld [vmem:[%s6545_s1 + $0x2d0] sm:$0xff]  ;;  %v4362_v51 = vcombine.high %v4325_v49, %v4329_v6 }
  0x8a   :  { %1060 = vmatprep.mubr.bf16.mxu0 %v5116_v3  ;;  %1133 = vmatprep.mubr.bf16.mxu1 %v5116_v3  ;;  %v4278_v14 = vcombine.high %v4239_v37, %v4243_v7  ;;  %v4277_v23 = vcombine.low %v4239_v37, %v4243_v7  ;;  %v4361_v62 = vcombine.low %v4325_v49, %v4329_v6  ;;  %v4346_v37 = vld [vmem:[%s6545_s1 + $0x448] sm:$0xff]  ;;  %v4343_v49 = vld [vmem:[%s6545_s1 + $0x430] sm:$0xff] }
  0x8b   :  { %1410 = vmatpush1.bf16.msra.mxu0 %v1378_v57  ;;  %1483 = vmatpush1.bf16.msra.mxu1 %v1384_v59  ;;  %v4337_v57 = vld [vmem:[%s6545_s1 + $0x400] sm:$0xff]  ;;  %v4334_v59 = vld [vmem:[%s6545_s1 + $0x3e8] sm:$0xff]  ;;  %v4363_v63 = vcombine.low %v4326_v52, %v4330_v53  ;;  %v4347_v6 = vld [vmem:[%s6545_s1 + $0x450] sm:$0xff] }
  0x8c   :  { %1547 = vmatprep.subr.bf16.mxu0 %v4262_v58  ;;  %1620 = vmatprep.subr.bf16.mxu1 %v4264_v61  ;;  %v4364_v58 = vcombine.high %v4326_v52, %v4330_v53  ;;  %v4338_v61 = vld [vmem:[%s6545_s1 + $0x408] sm:$0xff]  ;;  %v4344_v52 = vld [vmem:[%s6545_s1 + $0x438] sm:$0xff] }
  0x8d   :  { %v4372_v2 = vcombine.high %v4334_v59, %v4338_v61  ;;  %v4371_v7 = vcombine.low %v4334_v59, %v4338_v61  ;;  %v4348_v53 = vld [vmem:[%s6545_s1 + $0x458] sm:$0xff] }
  0x91   :  { %4215 = vmatmul.mubr.msk.bf16.gmra.mrb[28].mxu0 %vm306_vm1, %v5572_v10  ;;  %4220 = vmatmul.mubr.msk.bf16.gmra.mrb[28].mxu1 %vm306_vm1, %v5572_v10  ;;  %v4240_v10 = vld [vmem:[%s6545_s1 + $0x2d8] sm:$0xff] }
  0x92   :  { %1433 = vmatprep.mubr.bf16.mxu0 %v5116_v3  ;;  %1506 = vmatprep.mubr.bf16.mxu1 %v5116_v3  ;;  %v4280_v15 = vcombine.high %v4240_v10, %v4244_v11  ;;  %v4279_v38 = vcombine.low %v4240_v10, %v4244_v11  ;;  %v4349_v10 = vld [vmem:[%s6545_s1 + $0x460] sm:$0xff] }
  0x93   :  { %v4385_v22 = vcombine.low %v4349_v10, %v4349_v10 }
  0x99   :  { %4298 = vmatmul.mubr.msk.bf16.vlgmr.msra.gmra.mrb[0].mxu0 %vm306_vm1, %v5664_v60  ;;  %4303 = vmatmul.mubr.msk.bf16.vlgmr.msra.gmra.mrb[0].mxu1 %vm306_vm1, %v5664_v60 }
  0x9a   :  { %1548 = vmatpush1.bf16.msra.mxu0 %v4261_v0  ;;  %1621 = vmatpush1.bf16.msra.mxu1 %v4263_v5  ;;  %v4370_v0 = vcombine.high %v4333_v56, %v4337_v57  ;;  %v4369_v5 = vcombine.low %v4333_v56, %v4337_v57  ;;  %v4352_v56 = vld [vmem:[%s6545_s1 + $0x478] sm:$0xff]  ;;  %v4381_v57 = vcombine.low %v4343_v49, %v4347_v6 }
  0x9b   :  { %1443 = vmatprep.mubr.bf16.mxu0 %v5116_v3  ;;  %1516 = vmatprep.mubr.bf16.mxu1 %v5116_v3  ;;  %v4392_v61 = vcombine.high %v4352_v56, %v4352_v56 }
  0x9c   :  { %1549 = vmatprep.subr.bf16.mxu0 %v4270_v19  ;;  %1622 = vmatprep.subr.bf16.mxu1 %v4272_v8  ;;  %v4342_v19 = vld [vmem:[%s6545_s1 + $0x428] sm:$0xff] }
  0x9d   :  { %v4380_v11 = vcombine.high %v4342_v19, %v4346_v37 }
  0x9e   :  { %1550 = vmatpush1.bf16.msra.mxu0 %v4269_v12  ;;  %1623 = vmatpush1.bf16.msra.mxu1 %v4271_v13  ;;  %v4350_v12 = vld [vmem:[%s6545_s1 + $0x468] sm:$0xff] }
  0x9f   :  { %1551 = vmatprep.subr.bf16.mxu0 %v4278_v14  ;;  %1624 = vmatprep.subr.bf16.mxu1 %v4280_v15  ;;  %v4379_v14 = vcombine.low %v4342_v19, %v4346_v37  ;;  %v4386_v15 = vcombine.high %v4349_v10, %v4349_v10  ;;  %v4388_v21 = vcombine.high %v4350_v12, %v4350_v12  ;;  %v4993_v19 = vld [vmem:[%s6547_s3 + $0x8] sm:$0xff]   ;;  %v4997_v10 = vld [vmem:[%s6547_s3 + $0x10] sm:$0xff]  }
  0xa0   :  { %v4994_v37 = vld [vmem:[%s6547_s3 + $0xc8] sm:$0xff]  }
  0xa1   :  { %4299 = vmatmul.mubr.msk.bf16.gmra.mrb[4].mxu0 %vm306_vm1, %v5698_v16  ;;  %4304 = vmatmul.mubr.msk.bf16.gmra.mrb[4].mxu1 %vm306_vm1, %v5698_v16 }
  0xa2   :  { %1552 = vmatpush1.bf16.msra.mxu0 %v4277_v23  ;;  %1625 = vmatpush1.bf16.msra.mxu1 %v4279_v38  ;;  %v4387_v23 = vcombine.low %v4350_v12, %v4350_v12  ;;  %v4324_v38 = vld [vmem:[%s6545_s1 + $0x398] sm:$0xff]  ;;  %v4999_v12 = vld [vmem:[%s6547_s3 + $0x90] sm:$0xff]  }
  0xa3   :  { %1453 = vmatprep.mubr.bf16.mxu0 %v5116_v3  ;;  %1526 = vmatprep.mubr.bf16.mxu1 %v5116_v3  ;;  %v4360_v28 = vcombine.high %v4320_v25, %v4324_v38 }
  0xa4   :  { %1553 = vmatprep.subr.bf16.mxu0 %v4286_v54  ;;  %1626 = vmatprep.subr.bf16.mxu1 %v4288_v27  ;;  %v1991_v54 = vsel %vm319_vm0, %v4385_v22, 0  ;;  %v1997_v27 = vsel %vm319_vm0, %v4387_v23, 0  ;;  %v5004_v22 = vld [vmem:[%s6547_s3 + $0x60] sm:$0xff]  }
  0xa5   :  { %v5005_v23 = vld [vmem:[%s6547_s3 + $0x20] sm:$0xff]  }
  0xa6   :  { %1554 = vmatpush1.bf16.msra.mxu0 %v4285_v29  ;;  %1627 = vmatpush1.bf16.msra.mxu1 %v4287_v30  ;;  %v4327_v29 = vld [vmem:[%s6545_s1 + $0x3b0] sm:$0xff] }
  0xa7   :  { %4307 = vmatprep.subr.msk.bf16.mxu0 %vm319_vm0, %v4294_v31  ;;  %4312 = vmatprep.subr.msk.bf16.mxu1 %vm319_vm0, %v4296_v20  ;;  %v4331_v30 = vld [vmem:[%s6545_s1 + $0x3d0] sm:$0xff]  ;;  %v4328_v20 = vld [vmem:[%s6545_s1 + $0x3b8] sm:$0xff] }
  0xa8   :  { %v4366_v39 = vcombine.high %v4327_v29, %v4331_v30  ;;  %v4368_v43 = vcombine.high %v4328_v20, %v4332_v32 }
  0xa9   :  { %4300 = vmatmul.mubr.msk.bf16.gmra.mrb[8].mxu0 %vm306_vm1, %v5726_v33  ;;  %4305 = vmatmul.mubr.msk.bf16.gmra.mrb[8].mxu1 %vm306_vm1, %v5726_v33 }
  0xaa   :  { %1463 = vmatprep.mubr.bf16.mxu0 %v5116_v3  ;;  %1536 = vmatprep.mubr.bf16.mxu1 %v5116_v3 }
  0xab   :  { %1556 = vmatpush1.bf16.msra.mxu0 %v1390_v9  ;;  %1629 = vmatpush1.bf16.msra.mxu1 %v1396_v45  ;;  %v4340_v9 = vld [vmem:[%s6545_s1 + $0x418] sm:$0xff]  ;;  %v4367_v45 = vcombine.low %v4328_v20, %v4332_v32 }
  0xac   :  { %2014 = vmatprep.subr.bf16.mxu0 %v4354_v44  ;;  %2087 = vmatprep.subr.bf16.mxu1 %v4356_v46  ;;  %v4365_v44 = vcombine.low %v4327_v29, %v4331_v30  ;;  %v4374_v46 = vcombine.high %v4335_v40, %v4339_v41  ;;  %v4376_v47 = vcombine.high %v4336_v55, %v4340_v9  ;;  %v5014_v29 = vld [vmem:[%s6547_s3 + $0xf0] sm:$0xff]   ;;  %v5017_v20 = vld [vmem:[%s6547_s3 + $0x38] sm:$0xff]  }
  0xad   :  { %v5015_v30 = vld [vmem:[%s6547_s3 + $0xb0] sm:$0xff]   ;;  %v5018_v32 = vld [vmem:[%s6547_s3 + $0xf8] sm:$0xff]  }
  0xb1   :  { %4301 = vmatmul.mubr.msk.bf16.gmra.mrb[12].mxu0 %vm306_vm1, %v5754_v48  ;;  %4306 = vmatmul.mubr.msk.bf16.gmra.mrb[12].mxu1 %vm306_vm1, %v5754_v48 }
  0xb2   :  { %1579 = vmatprep.mubr.bf16.mxu0 %v5116_v3  ;;  %1652 = vmatprep.mubr.bf16.mxu1 %v5116_v3 }
  0xb9   :  { %4308 = vmatmul.mubr.msk.bf16.vlgmr.msra.gmra.mrb[16].mxu0 %vm306_vm1, %v5664_v60  ;;  %4313 = vmatmul.mubr.msk.bf16.vlgmr.msra.gmra.mrb[16].mxu1 %vm306_vm1, %v5664_v60  ;;  %v4345_v60 = vld [vmem:[%s6545_s1 + $0x440] sm:$0xff] }
  0xba   :  { %2015 = vmatpush1.bf16.msra.mxu0 %v4353_v50  ;;  %2088 = vmatpush1.bf16.msra.mxu1 %v4355_v42  ;;  %v4378_v8 = vcombine.high %v4341_v4, %v4345_v60  ;;  %v4377_v13 = vcombine.low %v4341_v4, %v4345_v60  ;;  %v4373_v50 = vcombine.low %v4335_v40, %v4339_v41  ;;  %v4351_v42 = vld [vmem:[%s6545_s1 + $0x470] sm:$0xff]  ;;  %v4990_v60 = vld [vmem:[%s6547_s3 + $0xc0] sm:$0xff]   ;;  %v2372_v41 = vlaneseq }
  0xbb   :  { %1589 = vmatprep.mubr.bf16.mxu0 %v5116_v3  ;;  %1662 = vmatprep.mubr.bf16.mxu1 %v5116_v3  ;;  %v4390_v59 = vcombine.high %v4351_v42, %v4351_v42  ;;  %v5022_v40 = vld [vmem:[%s6547_s3 + $0x1c0] sm:$0xff]  }
  0xbc   :  { %2016 = vmatprep.subr.bf16.mxu0 %v4362_v51  ;;  %2089 = vmatprep.subr.bf16.mxu1 %v4364_v58  ;;  %v4384_v51 = vcombine.high %v4344_v52, %v4348_v53  ;;  %v4383_v58 = vcombine.low %v4344_v52, %v4348_v53 }
  0xbe   :  { %2017 = vmatpush1.bf16.msra.mxu0 %v4361_v62  ;;  %2090 = vmatpush1.bf16.msra.mxu1 %v4363_v63  ;;  %v4389_v62 = vcombine.low %v4351_v42, %v4351_v42  ;;  %v1759_v63 = vpack.c.bf16 %v5345_v35, %v5313_v18  ;;  %v44_v18 = vld [vmem:[%s6546_s0 + $0x88] sm:$0xff] }
  0xbf   :  { %2018 = vmatprep.subr.bf16.mxu0 %v4370_v0  ;;  %2091 = vmatprep.subr.bf16.mxu1 %v4372_v2  ;;  %v4391_v0 = vcombine.low %v4352_v56, %v4352_v56  ;;  %v1760_v35 = vpack.c.bf16 %v44_v18, %v5350_v36  ;;  %v4989_v36 = vld [vmem:[%s6547_s3] sm:$0xff]  }
  0xc0   :  { %v2003_v2 = vsel %vm319_vm0, %v4389_v62, 0 }
  0xc1   :  { %4309 = vmatmul.mubr.msk.bf16.gmra.mrb[20].mxu0 %vm306_vm1, %v5698_v16  ;;  %4314 = vmatmul.mubr.msk.bf16.gmra.mrb[20].mxu1 %vm306_vm1, %v5698_v16  ;;  %v4323_v16 = vld [vmem:[%s6545_s1 + $0x390] sm:$0xff]  ;;  %v2009_v4 = vsel %vm319_vm0, %v4391_v0, 0 }
  0xc2   :  { %2019 = vmatpush1.bf16.msra.mxu0 %v4369_v5  ;;  %2092 = vmatpush1.bf16.msra.mxu1 %v4371_v7  ;;  %v4358_v26 = vcombine.high %v4319_v24, %v4323_v16  ;;  %v4357_v31 = vcombine.low %v4319_v24, %v4323_v16  ;;  %v4992_v5 = vld [vmem:[%s6547_s3 + $0x48] sm:$0xff]   ;;  %v5006_v24 = vld [vmem:[%s6547_s3 + $0xe0] sm:$0xff]  }
  0xc3   :  { %1599 = vmatprep.mubr.bf16.mxu0 %v5116_v3  ;;  %1672 = vmatprep.mubr.bf16.mxu1 %v5116_v3  ;;  %v4995_v7 = vld [vmem:[%s6547_s3 + $0x88] sm:$0xff]   ;;  %v5007_v16 = vld [vmem:[%s6547_s3 + $0xa0] sm:$0xff]  }
  0xc4   :  { %2020 = vmatprep.subr.bf16.mxu0 %v4378_v8  ;;  %2093 = vmatprep.subr.bf16.mxu1 %v4380_v11  ;;  %v4996_v8 = vld [vmem:[%s6547_s3 + $0x50] sm:$0xff]  }
  0xc5   :  { %v4998_v11 = vld [vmem:[%s6547_s3 + $0xd0] sm:$0xff]  }
  0xc6   :  { %2021 = vmatpush1.bf16.msra.mxu0 %v4377_v13  ;;  %2094 = vmatpush1.bf16.msra.mxu1 %v4379_v14  ;;  %v5000_v13 = vld [vmem:[%s6547_s3 + $0x58] sm:$0xff]  }
  0xc7   :  { %4393 = vmatprep.subr.msk.bf16.mxu0 %vm319_vm0, %v4386_v15  ;;  %4398 = vmatprep.subr.msk.bf16.mxu1 %vm319_vm0, %v4388_v21  ;;  %v5001_v14 = vld [vmem:[%s6547_s3 + $0x18] sm:$0xff]  }
  0xc8   :  { %v5002_v15 = vld [vmem:[%s6547_s3 + $0xd8] sm:$0xff]  }
  0xc9   :  { %4310 = vmatmul.mubr.msk.bf16.gmra.mrb[24].mxu0 %vm306_vm1, %v5726_v33  ;;  %4315 = vmatmul.mubr.msk.bf16.gmra.mrb[24].mxu1 %vm306_vm1, %v5726_v33  ;;  %v4359_v33 = vcombine.low %v4320_v25, %v4324_v38  ;;  %v5003_v21 = vld [vmem:[%s6547_s3 + $0x98] sm:$0xff]   ;;  %v5008_v25 = vld [vmem:[%s6547_s3 + $0x68] sm:$0xff]  }
  0xca   :  { %1609 = vmatprep.mubr.bf16.mxu0 %v5116_v3  ;;  %1682 = vmatprep.mubr.bf16.mxu1 %v5116_v3  ;;  %v5009_v38 = vld [vmem:[%s6547_s3 + $0x28] sm:$0xff]  }
  0xcb   :  { %2023 = vmatpush1.bf16.msra.mxu0 %v1991_v54  ;;  %2096 = vmatpush1.bf16.msra.mxu1 %v1997_v27  ;;  %v5010_v54 = vld [vmem:[%s6547_s3 + $0xe8] sm:$0xff]   ;;  %v5012_v27 = vld [vmem:[%s6547_s3 + $0x70] sm:$0xff]  }
  0xcc   :  { %2160 = vmatprep.subr.bf16.mxu0 %v4358_v26  ;;  %2233 = vmatprep.subr.bf16.mxu1 %v4360_v28  ;;  %v5011_v26 = vld [vmem:[%s6547_s3 + $0xa8] sm:$0xff]   ;;  %v5013_v28 = vld [vmem:[%s6547_s3 + $0x30] sm:$0xff]  }
  0xd1   :  { %4311 = vmatmul.mubr.msk.bf16.gmra.mrb[28].mxu0 %vm306_vm1, %v5754_v48  ;;  %4316 = vmatmul.mubr.msk.bf16.gmra.mrb[28].mxu1 %vm306_vm1, %v5754_v48  ;;  %v1758_v48 = vpack.c.bf16 %v5308_v17, %v5276_v1  ;;  %v4375_v1 = vcombine.low %v4336_v55, %v4340_v9  ;;  %v4382_v17 = vcombine.high %v4343_v49, %v4347_v6 }
  0xd2   :  { %2046 = vmatprep.mubr.bf16.mxu0 %v5116_v3  ;;  %2119 = vmatprep.mubr.bf16.mxu1 %v5116_v3 }
  0xd9   :  { %4394 = vmatmul.mubr.msk.bf16.vlgmr.msra.gmra.mrb[0].mxu0 %vm306_vm1, %v5219_v34  ;;  %4399 = vmatmul.mubr.msk.bf16.vlgmr.msra.gmra.mrb[0].mxu1 %vm306_vm1, %v5219_v34 }
  0xda   :  { %2161 = vmatpush1.bf16.msra.mxu0 %v4357_v31  ;;  %2234 = vmatpush1.bf16.msra.mxu1 %v4359_v33  ;;  %v5016_v31 = vld [vmem:[%s6547_s3 + $0x78] sm:$0xff]  }
  0xdb   :  { %2056 = vmatprep.mubr.bf16.mxu0 %v5116_v3  ;;  %2129 = vmatprep.mubr.bf16.mxu1 %v5116_v3  ;;  %v5019_v33 = vld [vmem:[%s6547_s3 + $0xb8] sm:$0xff]  }
  0xdc   :  { %2162 = vmatprep.subr.bf16.mxu0 %v4366_v39  ;;  %2235 = vmatprep.subr.bf16.mxu1 %v4368_v43  ;;  %v5020_v39 = vld [vmem:[%s6547_s3 + $0x140] sm:$0xff]   ;;  %v6034_v43 = vshrl.u32 %v2372_v41, 7 }
  0xde   :  { %2163 = vmatpush1.bf16.msra.mxu0 %v4365_v44  ;;  %2236 = vmatpush1.bf16.msra.mxu1 %v4367_v45  ;;  %v2374_v55 = vsub.s32 0, %v6034_v43  ;;  %v2382_v9 = vsub.s32 2, %v6034_v43  ;;  %v6041_v44 = vld [vmem:[%s6548_s2] sm:$0xff]  ;;  %v2378_v45 = vsub.s32 1, %v6034_v43 }
  0xdf   :  { %2164 = vmatprep.subr.bf16.mxu0 %v4374_v46  ;;  %2237 = vmatprep.subr.bf16.mxu1 %v4376_v47  ;;  %v2386_v46 = vsub.s32 3, %v6034_v43 }
  0xe0   :  { %v6046_v47 = vrot.slane %v6041_v44, %v2374_v55  ;;  %v6052_v49 = vrot.slane %v6041_v44, %v2378_v45 }
  0xe1   :  { %4395 = vmatmul.mubr.msk.bf16.gmra.mrb[4].mxu0 %vm306_vm1, %v1758_v48  ;;  %4400 = vmatmul.mubr.msk.bf16.gmra.mrb[4].mxu1 %vm306_vm1, %v1758_v48  ;;  %v6055_v6 = vrot.slane %v6041_v44, %v2386_v46 }
  0xe2   :  { %2165 = vmatpush1.bf16.msra.mxu0 %v4373_v50  ;;  %2238 = vmatpush1.bf16.msra.mxu1 %v4375_v1 }
  0xe3   :  { %2066 = vmatprep.mubr.bf16.mxu0 %v5116_v3  ;;  %2139 = vmatprep.mubr.bf16.mxu1 %v5116_v3 }
  0xe4   :  { %2166 = vmatprep.subr.bf16.mxu0 %v4382_v17  ;;  %2239 = vmatprep.subr.bf16.mxu1 %v4384_v51 }
  0xe6   :  { %2167 = vmatpush1.bf16.msra.mxu0 %v4381_v57  ;;  %2240 = vmatpush1.bf16.msra.mxu1 %v4383_v58 }
  0xe7   :  { %4403 = vmatprep.subr.msk.bf16.mxu0 %vm319_vm0, %v4390_v59  ;;  %4408 = vmatprep.subr.msk.bf16.mxu1 %vm319_vm0, %v4392_v61 }
  0xe9   :  { %4396 = vmatmul.mubr.msk.bf16.gmra.mrb[8].mxu0 %vm306_vm1, %v1759_v63  ;;  %4401 = vmatmul.mubr.msk.bf16.gmra.mrb[8].mxu1 %vm306_vm1, %v1759_v63 }
  0xea   :  { %2076 = vmatprep.mubr.bf16.mxu0 %v5116_v3  ;;  %2149 = vmatprep.mubr.bf16.mxu1 %v5116_v3 }
  0xeb   :  { %2169 = vmatpush1.bf16.msra.mxu0 %v2003_v2  ;;  %2242 = vmatpush1.bf16.msra.mxu1 %v2009_v4 }
  0xec   :  { %4566 = vmatprep.subr.bf16.mxu1 %v4990_v60 }
  0xf1   :  { %4397 = vmatmul.mubr.msk.bf16.gmra.mrb[12].mxu0 %vm306_vm1, %v1760_v35  ;;  %4402 = vmatmul.mubr.msk.bf16.gmra.mrb[12].mxu1 %vm306_vm1, %v1760_v35 }
  0xf2   :  { %2192 = vmatprep.mubr.bf16.mxu0 %v5116_v3  ;;  %2265 = vmatprep.mubr.bf16.mxu1 %v5116_v3 }
  0xf9   :  { %4404 = vmatmul.mubr.msk.bf16.vlgmr.msra.gmra.mrb[16].mxu0 %vm306_vm1, %v5219_v34  ;;  %4409 = vmatmul.mubr.msk.bf16.vlgmr.msra.gmra.mrb[16].mxu1 %vm306_vm1, %v5219_v34  ;;  %v4988_v34 = vld [vmem:[%s6547_s3 + $0x40] sm:$0xff]  }
  0xfa   :  { %2202 = vmatprep.mubr.bf16.mxu0 %v5116_v3  ;;  %2275 = vmatprep.mubr.bf16.mxu1 %v5116_v3 }
  0xfb   :  { %4544 = vmatprep.subr.bf16.mxu0 %v4988_v34 }
  0xfc   :  { %4545 = vmatpush3.bf16.msra.mxu0 %v4989_v36 }
  0xfd   :  { %4546 = vmatprep.subr.bf16.mxu0 %v4992_v5 }
 0x100   :  { %4547 = vmatpush3.bf16.msra.mxu0 %v4993_v19 }
 0x101   :  { %4405 = vmatmul.mubr.msk.bf16.gmra.mrb[20].mxu0 %vm306_vm1, %v1758_v48  ;;  %4410 = vmatmul.mubr.msk.bf16.gmra.mrb[20].mxu1 %vm306_vm1, %v1758_v48  ;;  %v6049_v48 = vrot.slane %v6041_v44, %v2382_v9 }
 0x102   :  { %2212 = vmatprep.mubr.bf16.mxu0 %v5116_v3  ;;  %2285 = vmatprep.mubr.bf16.mxu1 %v5116_v3 }
 0x103   :  { %4548 = vmatprep.subr.bf16.mxu0 %v4996_v8 }
 0x104   :  { %4549 = vmatpush3.bf16.msra.mxu0 %v4997_v10 }
 0x105   :  { %4550 = vmatprep.subr.bf16.mxu0 %v5000_v13 }
 0x108   :  { %4551 = vmatpush3.bf16.msra.mxu0 %v5001_v14 }
 0x109   :  { %4406 = vmatmul.mubr.msk.bf16.gmra.mrb[24].mxu0 %vm306_vm1, %v1759_v63  ;;  %4411 = vmatmul.mubr.msk.bf16.gmra.mrb[24].mxu1 %vm306_vm1, %v1759_v63 }
 0x10a   :  { %2222 = vmatprep.mubr.bf16.mxu0 %v5116_v3  ;;  %2295 = vmatprep.mubr.bf16.mxu1 %v5116_v3  ;;  %v4991_v3 = vld [vmem:[%s6547_s3 + $0x80] sm:$0xff]  }
 0x10b   :  { %4567 = vmatpush3.bf16.msra.mxu1 %v4991_v3  ;;  %4552 = vmatprep.subr.bf16.mxu0 %v5004_v22 }
 0x10c   :  { %4568 = vmatprep.subr.bf16.mxu1 %v4994_v37  ;;  %4553 = vmatpush3.bf16.msra.mxu0 %v5005_v23 }
 0x10d   :  { %4554 = vmatprep.subr.bf16.mxu0 %v5008_v25 }
 0x10f   :  { %4569 = vmatpush3.bf16.msra.mxu1 %v4995_v7 }
 0x110   :  { %4570 = vmatprep.subr.bf16.mxu1 %v4998_v11  ;;  %4555 = vmatpush3.bf16.msra.mxu0 %v5009_v38 }
 0x111   :  { %4407 = vmatmul.mubr.msk.bf16.gmra.mrb[28].mxu0 %vm306_vm1, %v1760_v35  ;;  %4412 = vmatmul.mubr.msk.bf16.gmra.mrb[28].mxu1 %vm306_vm1, %v1760_v35 }
 0x112   :  { %4556 = vmatprep.subr.bf16.mxu0 %v5012_v27 }
 0x113   :  { %4571 = vmatpush3.bf16.msra.mxu1 %v4999_v12 }
 0x114   :  { %4572 = vmatprep.subr.bf16.mxu1 %v5002_v15  ;;  %4557 = vmatpush3.bf16.msra.mxu0 %v5013_v28 }
 0x115   :  { %4558 = vmatprep.subr.bf16.mxu0 %v5016_v31 }
 0x117   :  { %4573 = vmatpush3.bf16.msra.mxu1 %v5003_v21 }
 0x118   :  { %4574 = vmatprep.subr.bf16.mxu1 %v5006_v24  ;;  %4559 = vmatpush3.bf16.msra.mxu0 %v5017_v20 }
 0x119   :  { %4588 = vmatprep.subr.bf16.mxu0 %v5020_v39 }
 0x11b   :  { %4575 = vmatpush3.bf16.msra.mxu1 %v5007_v16 }
 0x11c   :  { %4576 = vmatprep.subr.bf16.mxu1 %v5010_v54 }
 0x11f   :  { %4577 = vmatpush3.bf16.msra.mxu1 %v5011_v26 }
 0x120   :  { %4578 = vmatprep.subr.bf16.mxu1 %v5014_v29 }
 0x123   :  { %4579 = vmatpush3.bf16.msra.mxu1 %v5015_v30 }
 0x124   :  { %4580 = vmatprep.subr.bf16.mxu1 %v5018_v32 }
 0x127   :  { %4581 = vmatpush3.bf16.msra.mxu1 %v5019_v33 }
 0x128   :  { %4610 = vmatprep.subr.bf16.mxu1 %v5022_v40 }
 0x1ac   :  { %v2048_v50 = vpop.f32.mrb[0].mxu0  ;;  %v2121_v53 = vpop.f32.mrb[0].mxu1 }
 0x1ad   :  { %v2412_v52 = vadd.f32 %v6046_v47, %v2048_v50  ;;  %v2050_v1 = vpop.f32.mrb[1].mxu0  ;;  %v2414_v17 = vadd.f32 %v6049_v48, %v2121_v53  ;;  %v2123_v51 = vpop.f32.mrb[1].mxu1 }
 0x1ae   :  { %v2413_v42 = vadd.f32 %v6052_v49, %v2050_v1  ;;  %v2052_v56 = vpop.f32.mrb[2].mxu0  ;;  %v2415_v58 = vadd.f32 %v6055_v6, %v2123_v51  ;;  %v2125_v61 = vpop.f32.mrb[2].mxu1 }
 0x1af   :  { %v2476_v57 = vmax.f32 %v2412_v52, 0.0  ;;  %v2420_v59 = vadd.f32 %v6046_v47, %v2052_v56  ;;  %v2054_v62 = vpop.f32.mrb[3].mxu0  ;;  %v2478_v63 = vmax.f32 %v2414_v17, 0.0  ;;  %v2422_v2 = vadd.f32 %v6049_v48, %v2125_v61  ;;  %v2127_v18 = vpop.f32.mrb[3].mxu1 }
 0x1b0   :  { %v2477_v0 = vmax.f32 %v2413_v42, 0.0  ;;  %v2421_v4 = vadd.f32 %v6052_v49, %v2054_v62  ;;  %v2479_v35 = vmax.f32 %v2415_v58, 0.0  ;;  %v2423_v36 = vadd.f32 %v6055_v6, %v2127_v18 }
 0x1b1   :  { %v2484_v34 = vmax.f32 %v2420_v59, 0.0  ;;  %v6065_v60 = vmax.f32 %v2476_v57, %v2478_v63  ;;  %v2486_v3 = vmax.f32 %v2422_v2, 0.0 }
 0x1b2   :  { %v2485_v5 = vmax.f32 %v2421_v4, 0.0  ;;  %v6067_v19 = vmax.f32 %v2477_v0, %v2479_v35  ;;  %v2487_v37 = vmax.f32 %v2423_v36, 0.0 }
 0x1b3   :  { %v6069_v7 = vmax.f32 %v2484_v34, %v2486_v3 }
 0x1b4   :  { %v2058_v8 = vpop.f32.mrb[4].mxu0  ;;  %v6071_v10 = vmax.f32 %v2485_v5, %v2487_v37  ;;  %v2131_v12 = vpop.f32.mrb[4].mxu1  ;;  %v2390_v5 = vsub.s32 4, %v6034_v43 }
 0x1b5   :  { %v2428_v11 = vadd.f32 %v6046_v47, %v2058_v8  ;;  %v2060_v13 = vpop.f32.mrb[5].mxu0  ;;  %v2430_v14 = vadd.f32 %v6049_v48, %v2131_v12  ;;  %v2133_v21 = vpop.f32.mrb[5].mxu1 }
 0x1b6   :  { %v2429_v15 = vadd.f32 %v6052_v49, %v2060_v13  ;;  %v2062_v22 = vpop.f32.mrb[6].mxu0  ;;  %v2431_v24 = vadd.f32 %v6055_v6, %v2133_v21  ;;  %v2135_v25 = vpop.f32.mrb[6].mxu1 }
 0x1b7   :  { %v2492_v23 = vmax.f32 %v2428_v11, 0.0  ;;  %v2436_v16 = vadd.f32 %v6046_v47, %v2062_v22  ;;  %v2064_v38 = vpop.f32.mrb[7].mxu0  ;;  %v2494_v54 = vmax.f32 %v2430_v14, 0.0  ;;  %v2438_v27 = vadd.f32 %v6049_v48, %v2135_v25  ;;  %v2137_v29 = vpop.f32.mrb[7].mxu1 }
 0x1b8   :  { %v2493_v26 = vmax.f32 %v2429_v15, 0.0  ;;  %v2437_v28 = vadd.f32 %v6052_v49, %v2064_v38  ;;  %v2495_v30 = vmax.f32 %v2431_v24, 0.0  ;;  %v2439_v20 = vadd.f32 %v6055_v6, %v2137_v29 }
 0x1b9   :  { %v2500_v31 = vmax.f32 %v2436_v16, 0.0  ;;  %v6081_v32 = vmax.f32 %v2492_v23, %v2494_v54  ;;  %v2502_v33 = vmax.f32 %v2438_v27, 0.0  ;;  %v2398_v22 = vsub.s32 6, %v6034_v43 }
 0x1ba   :  { %v2501_v39 = vmax.f32 %v2437_v28, 0.0  ;;  %v6083_v40 = vmax.f32 %v2493_v26, %v2495_v30  ;;  %v2503_v41 = vmax.f32 %v2439_v20, 0.0  ;;  %v6111_v38 = vrot.slane %v6041_v44, %v2390_v5 }
 0x1bb   :  { %v6085_v55 = vmax.f32 %v2500_v31, %v2502_v33  ;;  %v2394_v54 = vsub.s32 5, %v6034_v43  ;;  %v2402_v31 = vsub.s32 7, %v6034_v43 }
 0x1bc   :  { %v2068_v9 = vpop.f32.mrb[8].mxu0  ;;  %v6087_v45 = vmax.f32 %v2501_v39, %v2503_v41  ;;  %v2141_v50 = vpop.f32.mrb[8].mxu1 }
 0x1bd   :  { %v2444_v46 = vadd.f32 %v6046_v47, %v2068_v9  ;;  %v2070_v52 = vpop.f32.mrb[9].mxu0  ;;  %v2446_v53 = vadd.f32 %v6049_v48, %v2141_v50  ;;  %v2143_v17 = vpop.f32.mrb[9].mxu1  ;;  %v6126_v43 = vrot.slane %v6041_v44, %v2394_v54 }
 0x1be   :  { %v2445_v1 = vadd.f32 %v6052_v49, %v2070_v52  ;;  %v2072_v42 = vpop.f32.mrb[10].mxu0  ;;  %v2447_v56 = vadd.f32 %v6055_v6, %v2143_v17  ;;  %v2145_v58 = vpop.f32.mrb[10].mxu1 }
 0x1bf   :  { %v2508_v51 = vmax.f32 %v2444_v46, 0.0  ;;  %v2452_v57 = vadd.f32 %v6046_v47, %v2072_v42  ;;  %v2074_v59 = vpop.f32.mrb[11].mxu0  ;;  %v2510_v61 = vmax.f32 %v2446_v53, 0.0  ;;  %v2454_v63 = vadd.f32 %v6049_v48, %v2145_v58  ;;  %v2147_v2 = vpop.f32.mrb[11].mxu1 }
 0x1c0   :  { %v2509_v62 = vmax.f32 %v2445_v1, 0.0  ;;  %v2453_v0 = vadd.f32 %v6052_v49, %v2074_v59  ;;  %v2511_v4 = vmax.f32 %v2447_v56, 0.0  ;;  %v2455_v35 = vadd.f32 %v6055_v6, %v2147_v2 }
 0x1c1   :  { %v2516_v18 = vmax.f32 %v2452_v57, 0.0  ;;  %v6097_v34 = vmax.f32 %v2508_v51, %v2510_v61  ;;  %v2518_v36 = vmax.f32 %v2454_v63, 0.0  ;;  %v6121_v53 = vrot.slane %v6041_v44, %v2398_v22 }
 0x1c2   :  { %v2517_v3 = vmax.f32 %v2453_v0, 0.0  ;;  %v6100_v37 = vmax.f32 %v2509_v62, %v2511_v4  ;;  %v2519_v8 = vmax.f32 %v2455_v35, 0.0 }
 0x1c3   :  { %v6102_v11 = vmax.f32 %v2516_v18, %v2518_v36 }
 0x1c4   :  { %v2078_v12 = vpop.f32.mrb[12].mxu0  ;;  %v6104_v13 = vmax.f32 %v2517_v3, %v2519_v8  ;;  %v2151_v15 = vpop.f32.mrb[12].mxu1 }
 0x1c5   :  { %v2460_v14 = vadd.f32 %v6046_v47, %v2078_v12  ;;  %v2080_v21 = vpop.f32.mrb[13].mxu0  ;;  %v2462_v23 = vadd.f32 %v6049_v48, %v2151_v15  ;;  %v2153_v16 = vpop.f32.mrb[13].mxu1 }
 0x1c6   :  { %v2461_v24 = vadd.f32 %v6052_v49, %v2080_v21  ;;  %v2082_v25 = vpop.f32.mrb[14].mxu0  ;;  %v2463_v27 = vadd.f32 %v6055_v6, %v2153_v16  ;;  %v2155_v29 = vpop.f32.mrb[14].mxu1 }
 0x1c7   :  { %v2524_v26 = vmax.f32 %v2460_v14, 0.0  ;;  %v2468_v28 = vadd.f32 %v6046_v47, %v2082_v25  ;;  %v2084_v30 = vpop.f32.mrb[15].mxu0  ;;  %v2526_v20 = vmax.f32 %v2462_v23, 0.0  ;;  %v2470_v39 = vadd.f32 %v6049_v48, %v2155_v29  ;;  %v2157_v9 = vpop.f32.mrb[15].mxu1 }
 0x1c8   :  { %v2525_v33 = vmax.f32 %v2461_v24, 0.0  ;;  %v2469_v41 = vadd.f32 %v6052_v49, %v2084_v30  ;;  %v2527_v46 = vmax.f32 %v2463_v27, 0.0  ;;  %v2471_v52 = vadd.f32 %v6055_v6, %v2157_v9 }
 0x1c9   :  { %v2532_v50 = vmax.f32 %v2468_v28, 0.0  ;;  %v6123_v1 = vmax.f32 %v2524_v26, %v2526_v20  ;;  %v2534_v47 = vmax.f32 %v2470_v39, 0.0  ;;  %v6131_v49 = vrot.slane %v6041_v44, %v2402_v31 }
 0x1ca   :  { %v2533_v17 = vmax.f32 %v2469_v41, 0.0  ;;  %v6128_v42 = vmax.f32 %v2525_v33, %v2527_v46  ;;  %v2535_v48 = vmax.f32 %v2471_v52, 0.0 }
 0x1cb   :  { %v6133_v51 = vmax.f32 %v2532_v50, %v2534_v47 }
 0x1cc   :  { %v2194_v56 = vpop.f32.mrb[16].mxu0  ;;  %v6135_v6 = vmax.f32 %v2533_v17, %v2535_v48  ;;  %v2267_v58 = vpop.f32.mrb[16].mxu1 }
 0x1cd   :  { %v2416_v57 = vadd.f32 %v6111_v38, %v2194_v56  ;;  %v2196_v59 = vpop.f32.mrb[17].mxu0  ;;  %v2418_v61 = vadd.f32 %v6121_v53, %v2267_v58  ;;  %v2269_v63 = vpop.f32.mrb[17].mxu1 }
 0x1ce   :  { %v2417_v62 = vadd.f32 %v6126_v43, %v2196_v59  ;;  %v2198_v0 = vpop.f32.mrb[18].mxu0  ;;  %v2419_v4 = vadd.f32 %v6131_v49, %v2269_v63  ;;  %v2271_v18 = vpop.f32.mrb[18].mxu1 }
 0x1cf   :  { %v2480_v2 = vmax.f32 %v2416_v57, 0.0  ;;  %v2424_v44 = vadd.f32 %v6111_v38, %v2198_v0  ;;  %v2200_v35 = vpop.f32.mrb[19].mxu0  ;;  %v2482_v36 = vmax.f32 %v2418_v61, 0.0  ;;  %v2426_v5 = vadd.f32 %v6121_v53, %v2271_v18  ;;  %v2273_v12 = vpop.f32.mrb[19].mxu1  ;;  %v5024_v61 = vld [vmem:[%s6547_s3 + $0x148] sm:$0xff]  }
 0x1d0   :  { %v2481_v3 = vmax.f32 %v2417_v62, 0.0  ;;  %v2425_v8 = vadd.f32 %v6126_v43, %v2200_v35  ;;  %v2483_v14 = vmax.f32 %v2419_v4, 0.0  ;;  %v2427_v21 = vadd.f32 %v6131_v49, %v2273_v12 }
 0x1d1   :  { %v2488_v15 = vmax.f32 %v2424_v44, 0.0  ;;  %v2556_v22 = vmax.f32 %v2480_v2, %v2482_v36  ;;  %v2490_v23 = vmax.f32 %v2426_v5, 0.0  ;;  %v5025_v5 = vld [vmem:[%s6547_s3 + $0x108] sm:$0xff]  }
 0x1d2   :  { %v2489_v24 = vmax.f32 %v2425_v8, 0.0  ;;  %v2557_v16 = vmax.f32 %v2481_v3, %v2483_v14  ;;  %v2491_v25 = vmax.f32 %v2427_v21, 0.0 }
 0x1d3   :  { %v2572_v54 = vmax.f32 %v6065_v60, %v2556_v22  ;;  %v2558_v26 = vmax.f32 %v2488_v15, %v2490_v23  ;;  %v5023_v15 = vld [vmem:[%s6547_s3 + $0x180] sm:$0xff]  }
 0x1d4   :  { %v2204_v27 = vpop.f32.mrb[20].mxu0  ;;  %v2559_v28 = vmax.f32 %v2489_v24, %v2491_v25  ;;  %v2277_v30 = vpop.f32.mrb[20].mxu1  ;;  %v2573_v20 = vmax.f32 %v6067_v19, %v2557_v16  ;;  %v5021_v19 = vld [vmem:[%s6547_s3 + $0x100] sm:$0xff]  }
 0x1d5   :  { %v2432_v29 = vadd.f32 %v6111_v38, %v2204_v27  ;;  %v2206_v31 = vpop.f32.mrb[21].mxu0  ;;  %v2574_v33 = vmax.f32 %v6069_v7, %v2558_v26  ;;  %v2434_v39 = vadd.f32 %v6121_v53, %v2277_v30  ;;  %v2279_v9 = vpop.f32.mrb[21].mxu1  ;;  %v2588_v56 = vpack.c.bf16 %v2572_v54, %v2572_v54 }
 0x1d6   :  { %v2433_v41 = vadd.f32 %v6126_v43, %v2206_v31  ;;  %v2208_v46 = vpop.f32.mrb[22].mxu0  ;;  %v2435_v60 = vadd.f32 %v6131_v49, %v2279_v9  ;;  %v2281_v47 = vpop.f32.mrb[22].mxu1  ;;  %v2589_v48 = vpack.c.bf16 %v2573_v20, %v2573_v20  ;;  %v2575_v18 = vmax.f32 %v6071_v10, %v2559_v28  ;;  %v5028_v10 = vld [vmem:[%s6547_s3 + $0x150] sm:$0xff]  }
 0x1d7   :  { %v2496_v50 = vmax.f32 %v2432_v29, 0.0  ;;  %v2440_v52 = vadd.f32 %v6111_v38, %v2208_v46  ;;  %v2210_v17 = vpop.f32.mrb[23].mxu0  ;;  %v2498_v7 = vmax.f32 %v2434_v39, 0.0  ;;  %v2442_v58 = vadd.f32 %v6121_v53, %v2281_v47  ;;  %v2283_v59 = vpop.f32.mrb[23].mxu1  ;;  %v5032_v47 = vld [vmem:[%s6547_s3 + $0x158] sm:$0xff]  }
 0x1d8   :  { %v2497_v57 = vmax.f32 %v2433_v41, 0.0  ;;  %v2499_v62 = vmax.f32 %v2435_v60, 0.0  ;;  %v2441_v0 = vadd.f32 %v6126_v43, %v2210_v17  ;;  %v2443_v2 = vadd.f32 %v6131_v49, %v2283_v59  ;;  %2988 = vmatprep.mubr.bf16.mxu0 %v2589_v48 }
 0x1d9   :  { %v2504_v63 = vmax.f32 %v2440_v52, 0.0  ;;  %v2560_v4 = vmax.f32 %v2496_v50, %v2498_v7  ;;  %v2506_v44 = vmax.f32 %v2442_v58, 0.0  ;;  %2989 = vmatmul.mubr.bf16.vlgmr.msra.gmra.mrb[32].mxu0 %v2588_v56  ;;  %v2591_v14 = vpack.c.bf16 %v2575_v18, %v2575_v18  ;;  %v5027_v52 = vld [vmem:[%s6547_s3 + $0x188] sm:$0xff]   ;;  %v5030_v7 = vld [vmem:[%s6547_s3 + $0x1d0] sm:$0xff]  }
 0x1da   :  { %v2561_v35 = vmax.f32 %v2497_v57, %v2499_v62  ;;  %v2505_v36 = vmax.f32 %v2441_v0, 0.0  ;;  %v2507_v3 = vmax.f32 %v2443_v2, 0.0  ;;  %4589 = vmatpush3.bf16.msra.mxu0 %v5021_v19  ;;  %v2590_v22 = vpack.c.bf16 %v2574_v33, %v2574_v33  ;;  %v5033_v0 = vld [vmem:[%s6547_s3 + $0x118] sm:$0xff]   ;;  %v5031_v18 = vld [vmem:[%s6547_s3 + $0x190] sm:$0xff]  }
 0x1db   :  { %v6167_v8 = vmax.f32 %v6081_v32, %v2560_v4  ;;  %v2562_v12 = vmax.f32 %v2504_v63, %v2506_v44  ;;  %4590 = vmatprep.subr.bf16.mxu0 %v5024_v61  ;;  %v5026_v32 = vld [vmem:[%s6547_s3 + $0x1c8] sm:$0xff]   ;;  %3124 = vmatprep.mubr.bf16.mxu1 %v2591_v14 }
 0x1dc   :  { %v2214_v21 = vpop.f32.mrb[24].mxu0  ;;  %v2563_v23 = vmax.f32 %v2505_v36, %v2507_v3  ;;  %v2287_v16 = vpop.f32.mrb[24].mxu1  ;;  %v2577_v54 = vmax.f32 %v6083_v40, %v2561_v35  ;;  %3125 = vmatmul.mubr.bf16.vlgmr.msra.gmra.mrb[32].mxu1 %v2590_v22 }
 0x1dd   :  { %v2448_v24 = vadd.f32 %v6111_v38, %v2214_v21  ;;  %v2216_v25 = vpop.f32.mrb[25].mxu0  ;;  %v6181_v26 = vmax.f32 %v6085_v55, %v2562_v12  ;;  %v2450_v27 = vadd.f32 %v6121_v53, %v2287_v16  ;;  %v2289_v29 = vpop.f32.mrb[25].mxu1  ;;  %v5029_v55 = vld [vmem:[%s6547_s3 + $0x110] sm:$0xff]   ;;  %4611 = vmatpush3.bf16.msra.mxu1 %v5023_v15  ;;  %v5034_v12 = vld [vmem:[%s6547_s3 + $0x1d8] sm:$0xff]  }
 0x1de   :  { %v2449_v28 = vadd.f32 %v6126_v43, %v2216_v25  ;;  %v2218_v30 = vpop.f32.mrb[26].mxu0  ;;  %v2451_v20 = vadd.f32 %v6131_v49, %v2289_v29  ;;  %4591 = vmatpush3.bf16.msra.mxu0 %v5025_v5  ;;  %v2291_v39 = vpop.f32.mrb[26].mxu1  ;;  %v2593_v40 = vpack.c.bf16 %v2577_v54, %v2577_v54  ;;  %4612 = vmatprep.subr.bf16.mxu1 %v5026_v32 }
 0x1df   :  { %v2512_v31 = vmax.f32 %v2448_v24, 0.0  ;;  %v2456_v33 = vadd.f32 %v6111_v38, %v2218_v30  ;;  %v2220_v41 = vpop.f32.mrb[27].mxu0  ;;  %v2514_v9 = vmax.f32 %v2450_v27, 0.0  ;;  %v2458_v50 = vadd.f32 %v6121_v53, %v2291_v39  ;;  %v2293_v60 = vpop.f32.mrb[27].mxu1  ;;  %4592 = vmatprep.subr.bf16.mxu0 %v5028_v10  ;;  %v5035_v30 = vld [vmem:[%s6547_s3 + $0x198] sm:$0xff]  }
 0x1e0   :  { %v2513_v46 = vmax.f32 %v2449_v28, 0.0  ;;  %v2515_v17 = vmax.f32 %v2451_v20, 0.0  ;;  %v2457_v19 = vadd.f32 %v6126_v43, %v2220_v41  ;;  %v2459_v56 = vadd.f32 %v6131_v49, %v2293_v60  ;;  %3260 = vmatprep.mubr.bf16.mxu0 %v2593_v40  ;;  %v5041_v60 = vld [vmem:[%s6547_s3 + $0x128] sm:$0xff]  }
 0x1e1   :  { %v2520_v48 = vmax.f32 %v2456_v33, 0.0  ;;  %v2564_v57 = vmax.f32 %v2512_v31, %v2514_v9  ;;  %v2522_v58 = vmax.f32 %v2458_v50, 0.0  ;;  %v2579_v59 = vmax.f32 %v6087_v45, %v2563_v23  ;;  %4613 = vmatpush3.bf16.msra.mxu1 %v5027_v52  ;;  %v5036_v45 = vld [vmem:[%s6547_s3 + $0x160] sm:$0xff]  }
 0x1e2   :  { %v2565_v61 = vmax.f32 %v2513_v46, %v2515_v17  ;;  %v2521_v62 = vmax.f32 %v2457_v19, 0.0  ;;  %v2523_v63 = vmax.f32 %v2459_v56, 0.0  ;;  %4593 = vmatpush3.bf16.msra.mxu0 %v5029_v55  ;;  %4614 = vmatprep.subr.bf16.mxu1 %v5030_v7  ;;  %v5039_v52 = vld [vmem:[%s6547_s3 + $0x1a0] sm:$0xff]   ;;  %v5042_v17 = vld [vmem:[%s6547_s3 + $0x1e8] sm:$0xff]   ;;  %v5045_v19 = vld [vmem:[%s6547_s3 + $0x130] sm:$0xff]  }
 0x1e3   :  { %v6207_v2 = vmax.f32 %v6097_v34, %v2564_v57  ;;  %v2566_v4 = vmax.f32 %v2520_v48, %v2522_v58  ;;  %v2595_v44 = vpack.c.bf16 %v2579_v59, %v2579_v59  ;;  %4594 = vmatprep.subr.bf16.mxu0 %v5032_v47  ;;  %v5043_v7 = vld [vmem:[%s6547_s3 + $0x1a8] sm:$0xff]   ;;  %v5047_v57 = vld [vmem:[%s6547_s3 + $0x1b0] sm:$0xff]   ;;  %v5052_v58 = vld [vmem:[%s6547_s3 + $0x240] sm:$0xff]  }
 0x1e4   :  { %v2224_v35 = vpop.f32.mrb[28].mxu0  ;;  %v2567_v36 = vmax.f32 %v2521_v62, %v2523_v63  ;;  %v2297_v5 = vpop.f32.mrb[28].mxu1  ;;  %v6220_v14 = vmax.f32 %v6100_v37, %v2565_v61  ;;  %v5037_v37 = vld [vmem:[%s6547_s3 + $0x120] sm:$0xff]   ;;  %v5050_v59 = vld [vmem:[%s6547_s3 + $0x1f8] sm:$0xff]   ;;  %v2592_v62 = vpack.c.bf16 %v6167_v8, %v6167_v8  ;;  %v5057_v8 = vld [vmem:[%s6547_s3 + $0x208] sm:$0xff]  }
 0x1e5   :  { %v2464_v3 = vadd.f32 %v6111_v38, %v2224_v35  ;;  %v2226_v34 = vpop.f32.mrb[29].mxu0  ;;  %v6223_v15 = vmax.f32 %v6102_v11, %v2566_v4  ;;  %3396 = vmatprep.mubr.bf16.mxu1 %v2595_v44  ;;  %v2466_v21 = vadd.f32 %v6121_v53, %v2297_v5  ;;  %v2299_v22 = vpop.f32.mrb[29].mxu1  ;;  %4615 = vmatpush3.bf16.msra.mxu1 %v5031_v18  ;;  %v5053_v61 = vld [vmem:[%s6547_s3 + $0x200] sm:$0xff]   ;;  %v5051_v63 = vld [vmem:[%s6547_s3 + $0x1b8] sm:$0xff]   ;;  %v5061_v5 = vld [vmem:[%s6547_s3 + $0x210] sm:$0xff]  }
 0x1e6   :  { %v2465_v10 = vadd.f32 %v6126_v43, %v2226_v34  ;;  %v2228_v23 = vpop.f32.mrb[30].mxu0  ;;  %v2467_v16 = vadd.f32 %v6131_v49, %v2299_v22  ;;  %4595 = vmatpush3.bf16.msra.mxu0 %v5033_v0  ;;  %v2301_v32 = vpop.f32.mrb[30].mxu1  ;;  %4616 = vmatprep.subr.bf16.mxu1 %v5034_v12  ;;  %v2583_v55 = vmax.f32 %v6104_v13, %v2567_v36  ;;  %v5044_v13 = vld [vmem:[%s6547_s3 + $0x170] sm:$0xff]   ;;  %v5056_v0 = vld [vmem:[%s6547_s3 + $0x248] sm:$0xff]   ;;  %v5054_v44 = vld [vmem:[%s6547_s3 + $0x2c0] sm:$0xff]  }
 0x1e7   :  { %v2528_v24 = vmax.f32 %v2464_v3, 0.0  ;;  %v2472_v25 = vadd.f32 %v6111_v38, %v2228_v23  ;;  %v2230_v54 = vpop.f32.mrb[31].mxu0  ;;  %v2530_v11 = vmax.f32 %v2466_v21, 0.0  ;;  %v2474_v28 = vadd.f32 %v6121_v53, %v2301_v32  ;;  %v2303_v29 = vpop.f32.mrb[31].mxu1  ;;  %4596 = vmatprep.subr.bf16.mxu0 %v5036_v45  ;;  %v5040_v38 = vld [vmem:[%s6547_s3 + $0x168] sm:$0xff]   ;;  %v5038_v53 = vld [vmem:[%s6547_s3 + $0x1e0] sm:$0xff]  }
 0x1e8   :  { %v2529_v27 = vmax.f32 %v2465_v10, 0.0  ;;  %v2531_v31 = vmax.f32 %v2467_v16, 0.0  ;;  %v2473_v33 = vadd.f32 %v6126_v43, %v2230_v54  ;;  %v2475_v39 = vadd.f32 %v6131_v49, %v2303_v29  ;;  %v5055_v18 = vld [vmem:[%s6547_s3 + $0x280] sm:$0xff]   ;;  %v5058_v45 = vld [vmem:[%s6547_s3 + $0x2c8] sm:$0xff]   ;;  %v5060_v36 = vld [vmem:[%s6547_s3 + $0x250] sm:$0xff]  }
 0x1e9   :  { %v2536_v20 = vmax.f32 %v2472_v25, 0.0  ;;  %v2568_v41 = vmax.f32 %v2528_v24, %v2530_v11  ;;  %v2538_v40 = vmax.f32 %v2474_v28, 0.0  ;;  %4617 = vmatpush3.bf16.msra.mxu1 %v5035_v30  ;;  %v2597_v4 = vpack.c.bf16 %v6220_v14, %v6220_v14  ;;  %v5064_v34 = vld [vmem:[%s6547_s3 + $0x258] sm:$0xff]   ;;  %v5062_v12 = vld [vmem:[%s6547_s3 + $0x2d0] sm:$0xff]   ;;  %v5068_v10 = vld [vmem:[%s6547_s3 + $0x260] sm:$0xff]  }
 0x1ea   :  { %v2569_v9 = vmax.f32 %v2529_v27, %v2531_v31  ;;  %v2537_v46 = vmax.f32 %v2473_v33, 0.0  ;;  %v2539_v50 = vmax.f32 %v2475_v39, 0.0  ;;  %4597 = vmatpush3.bf16.msra.mxu0 %v5037_v37  ;;  %4618 = vmatprep.subr.bf16.mxu1 %v5038_v53  ;;  %v2594_v35 = vpack.c.bf16 %v6181_v26, %v6181_v26  ;;  %v5059_v26 = vld [vmem:[%s6547_s3 + $0x288] sm:$0xff]   ;;  %v5065_v14 = vld [vmem:[%s6547_s3 + $0x218] sm:$0xff]   ;;  %v5063_v21 = vld [vmem:[%s6547_s3 + $0x290] sm:$0xff]  }
 0x1eb   :  { %v6249_v43 = vmax.f32 %v6123_v1, %v2568_v41  ;;  %v2570_v49 = vmax.f32 %v2536_v20, %v2538_v40  ;;  %4598 = vmatprep.subr.bf16.mxu0 %v5040_v38  ;;  %v2599_v3 = vpack.c.bf16 %v2583_v55, %v2583_v55  ;;  %v5066_v22 = vld [vmem:[%s6547_s3 + $0x2d8] sm:$0xff]   ;;  %v5069_v23 = vld [vmem:[%s6547_s3 + $0x220] sm:$0xff]   ;;  %v5072_v16 = vld [vmem:[%s6547_s3 + $0x268] sm:$0xff]   ;;  %v2596_v53 = vpack.c.bf16 %v6207_v2, %v6207_v2 }
 0x1ec   :  { %v2571_v47 = vmax.f32 %v2537_v46, %v2539_v50  ;;  %v6261_v1 = vmax.f32 %v6128_v42, %v2569_v9  ;;  %v5048_v42 = vld [vmem:[%s6547_s3 + $0x178] sm:$0xff]   ;;  %v5070_v25 = vld [vmem:[%s6547_s3 + $0x2e0] sm:$0xff]   ;;  %v5073_v32 = vld [vmem:[%s6547_s3 + $0x228] sm:$0xff]   ;;  %v2598_v50 = vpack.c.bf16 %v6223_v15, %v6223_v15 }
 0x1ed   :  { %v6264_v48 = vmax.f32 %v6133_v51, %v2570_v49  ;;  %4619 = vmatpush3.bf16.msra.mxu1 %v5039_v52  ;;  %v5046_v51 = vld [vmem:[%s6547_s3 + $0x1f0] sm:$0xff]   ;;  %v5067_v24 = vld [vmem:[%s6547_s3 + $0x298] sm:$0xff]   ;;  %v5071_v54 = vld [vmem:[%s6547_s3 + $0x2a0] sm:$0xff]  }
 0x1ee   :  { %4599 = vmatpush3.bf16.msra.mxu0 %v5041_v60  ;;  %v6270_v56 = vmax.f32 %v6135_v6, %v2571_v47  ;;  %4620 = vmatprep.subr.bf16.mxu1 %v5042_v17  ;;  %v5049_v6 = vld [vmem:[%s6547_s3 + $0x138] sm:$0xff]   ;;  %v5076_v37 = vld [vmem:[%s6547_s3 + $0x270] sm:$0xff]   ;;  %v5074_v11 = vld [vmem:[%s6547_s3 + $0x2e8] sm:$0xff]   ;;  %v2601_v55 = vpack.c.bf16 %v6261_v1, %v6261_v1 }
 0x1ef   :  { %4600 = vmatprep.subr.bf16.mxu0 %v5044_v13  ;;  %v5077_v27 = vld [vmem:[%s6547_s3 + $0x230] sm:$0xff]   ;;  %v5075_v28 = vld [vmem:[%s6547_s3 + $0x2a8] sm:$0xff]   ;;  %v5080_v29 = vld [vmem:[%s6547_s3 + $0x278] sm:$0xff]  }
 0x1f0   :  { %v5078_v30 = vld [vmem:[%s6547_s3 + $0x2f0] sm:$0xff]   ;;  %v5081_v38 = vld [vmem:[%s6547_s3 + $0x238] sm:$0xff]   ;;  %v5084_v20 = vld [vmem:[%s6547_s3 + $0x340] sm:$0xff]   ;;  %v2603_v52 = vpack.c.bf16 %v6270_v56, %v6270_v56 }
 0x1f1   :  { %4621 = vmatpush3.bf16.msra.mxu1 %v5043_v7  ;;  %v5079_v31 = vld [vmem:[%s6547_s3 + $0x2b0] sm:$0xff]   ;;  %v5082_v33 = vld [vmem:[%s6547_s3 + $0x2f8] sm:$0xff]   ;;  %v5085_v39 = vld [vmem:[%s6547_s3 + $0x300] sm:$0xff]  }
 0x1f2   :  { %4601 = vmatpush3.bf16.msra.mxu0 %v5045_v19  ;;  %4622 = vmatprep.subr.bf16.mxu1 %v5046_v51  ;;  %v5083_v41 = vld [vmem:[%s6547_s3 + $0x2b8] sm:$0xff]   ;;  %v5088_v40 = vld [vmem:[%s6547_s3 + $0x348] sm:$0xff]   ;;  %v5086_v9 = vld [vmem:[%s6547_s3 + $0x3c0] sm:$0xff]  }
 0x1f3   :  { %4602 = vmatprep.subr.bf16.mxu0 %v5048_v42  ;;  %v5089_v2 = vld [vmem:[%s6547_s3 + $0x308] sm:$0xff]   ;;  %v5087_v46 = vld [vmem:[%s6547_s3 + $0x380] sm:$0xff]   ;;  %v5092_v49 = vld [vmem:[%s6547_s3 + $0x350] sm:$0xff]  }
 0x1f4   :  { %v5090_v60 = vld [vmem:[%s6547_s3 + $0x3c8] sm:$0xff]   ;;  %v5093_v13 = vld [vmem:[%s6547_s3 + $0x310] sm:$0xff]   ;;  %v5096_v47 = vld [vmem:[%s6547_s3 + $0x358] sm:$0xff]  }
 0x1f5   :  { %4623 = vmatpush3.bf16.msra.mxu1 %v5047_v57  ;;  %v5091_v15 = vld [vmem:[%s6547_s3 + $0x388] sm:$0xff]   ;;  %v5094_v17 = vld [vmem:[%s6547_s3 + $0x3d0] sm:$0xff]   ;;  %v5097_v1 = vld [vmem:[%s6547_s3 + $0x318] sm:$0xff]  }
 0x1f6   :  { %4603 = vmatpush3.bf16.msra.mxu0 %v5049_v6  ;;  %4624 = vmatprep.subr.bf16.mxu1 %v5050_v59  ;;  %v5095_v19 = vld [vmem:[%s6547_s3 + $0x390] sm:$0xff]   ;;  %v5100_v56 = vld [vmem:[%s6547_s3 + $0x360] sm:$0xff]   ;;  %v5098_v7 = vld [vmem:[%s6547_s3 + $0x3d8] sm:$0xff]  }
 0x1f7   :  { %4632 = vmatprep.subr.bf16.mxu0 %v5052_v58  ;;  %v5101_v42 = vld [vmem:[%s6547_s3 + $0x320] sm:$0xff]   ;;  %v5099_v51 = vld [vmem:[%s6547_s3 + $0x398] sm:$0xff]   ;;  %v5104_v6 = vld [vmem:[%s6547_s3 + $0x368] sm:$0xff]  }
 0x1f8   :  { %v5102_v57 = vld [vmem:[%s6547_s3 + $0x3e0] sm:$0xff]   ;;  %v5105_v58 = vld [vmem:[%s6547_s3 + $0x328] sm:$0xff]  }
 0x1f9   :  { %3261 = vmatmul.mubr.bf16.vlgmr.msra.gmra.mrb[36].mxu0 %v2592_v62  ;;  %4625 = vmatpush3.bf16.msra.mxu1 %v5051_v63  ;;  %v5103_v59 = vld [vmem:[%s6547_s3 + $0x3a0] sm:$0xff]   ;;  %v5106_v62 = vld [vmem:[%s6547_s3 + $0x3e8] sm:$0xff]   ;;  %v5109_v63 = vld [vmem:[%s6547_s3 + $0x330] sm:$0xff]  }
 0x1fa   :  { %4633 = vmatpush3.bf16.msra.mxu0 %v5053_v61  ;;  %3532 = vmatprep.mubr.bf16.mxu0 %v2597_v4  ;;  %v5108_v61 = vld [vmem:[%s6547_s3 + $0x370] sm:$0xff]   ;;  %v5112_v4 = vld [vmem:[%s6547_s3 + $0x378] sm:$0xff]  }
 0x1fb   :  { %4634 = vmatprep.subr.bf16.mxu0 %v5056_v0  ;;  %4654 = vmatprep.subr.bf16.mxu1 %v5054_v44  ;;  %v5107_v0 = vld [vmem:[%s6547_s3 + $0x3a8] sm:$0xff]   ;;  %v5110_v44 = vld [vmem:[%s6547_s3 + $0x3f0] sm:$0xff]  }
 0x1fc   :  { %3397 = vmatmul.mubr.bf16.vlgmr.msra.gmra.mrb[36].mxu1 %v2594_v35  ;;  %v5114_v35 = vld [vmem:[%s6547_s3 + $0x3f8] sm:$0xff]  }
 0x1fd   :  { %4655 = vmatpush3.bf16.msra.mxu1 %v5055_v18  ;;  %3668 = vmatprep.mubr.bf16.mxu1 %v2599_v3  ;;  %v5111_v18 = vld [vmem:[%s6547_s3 + $0x3b0] sm:$0xff]   ;;  %v2602_v3 = vpack.c.bf16 %v6264_v48, %v6264_v48  ;;  %v3975_v48 = vld [vmem:[%s6549_s5 + $0x18] sm:$0xff] }
 0x1fe   :  { %4635 = vmatpush3.bf16.msra.mxu0 %v5057_v8  ;;  %4656 = vmatprep.subr.bf16.mxu1 %v5058_v45  ;;  %v5113_v8 = vld [vmem:[%s6547_s3 + $0x338] sm:$0xff]   ;;  %v2600_v45 = vpack.c.bf16 %v6249_v43, %v6249_v43  ;;  %v3973_v43 = vld [vmem:[%s6549_s5 + $0x8] sm:$0xff] }
 0x1ff   :  { %4636 = vmatprep.subr.bf16.mxu0 %v5060_v36  ;;  %v5115_v36 = vld [vmem:[%s6547_s3 + $0x3b8] sm:$0xff]  }
 0x201   :  { %4657 = vmatpush3.bf16.msra.mxu1 %v5059_v26  ;;  %v3972_v26 = vld [vmem:[%s6549_s5] sm:$0xff] }
 0x202   :  { %4637 = vmatpush3.bf16.msra.mxu0 %v5061_v5  ;;  %4658 = vmatprep.subr.bf16.mxu1 %v5062_v12  ;;  %v5117_v5 = vmov 0.0|0.0   ;;  %v3974_v12 = vld [vmem:[%s6549_s5 + $0x10] sm:$0xff] }
 0x203   :  { %4638 = vmatprep.subr.bf16.mxu0 %v5064_v34  ;;  %v4749_v34 = vpack.c.bf16 %v3973_v43, %v3972_v26 }
 0x205   :  { %4659 = vmatpush3.bf16.msra.mxu1 %v5063_v21  ;;  %v3976_v21 = vld [vmem:[%s6549_s5 + $0x20] sm:$0xff] }
 0x206   :  { %4639 = vmatpush3.bf16.msra.mxu0 %v5065_v14  ;;  %4660 = vmatprep.subr.bf16.mxu1 %v5066_v22  ;;  %v4752_v14 = vpack.c.bf16 %v3975_v48, %v3974_v12  ;;  %v4541_v12 = vld [vmem:[%s6550_s4] ss:$0 sm:$0xff] }
 0x207   :  { %4640 = vmatprep.subr.bf16.mxu0 %v5068_v10  ;;  %v3977_v10 = vld [vmem:[%s6549_s5 + $0x28] sm:$0xff] }
 0x208   :  { %v4755_v22 = vpack.c.bf16 %v3977_v10, %v3976_v21  ;;  %v4542_v21 = vld [vmem:[%s6551_s6] ss:$0 sm:$0xff] }
 0x209   :  { %4661 = vmatpush3.bf16.msra.mxu1 %v5067_v24  ;;  %v3979_v24 = vld [vmem:[%s6549_s5 + $0x38] sm:$0xff] }
 0x20a   :  { %4641 = vmatpush3.bf16.msra.mxu0 %v5069_v23  ;;  %4662 = vmatprep.subr.bf16.mxu1 %v5070_v25  ;;  %v3978_v23 = vld [vmem:[%s6549_s5 + $0x30] sm:$0xff]  ;;  %v5119_v25 = vmov 0.0  }
 0x20b   :  { %4642 = vmatprep.subr.bf16.mxu0 %v5072_v16  ;;  %v4758_v16 = vpack.c.bf16 %v3979_v24, %v3978_v23 }
 0x20d   :  { %4663 = vmatpush3.bf16.msra.mxu1 %v5071_v54 }
 0x20e   :  { %4643 = vmatpush3.bf16.msra.mxu0 %v5073_v32  ;;  %4664 = vmatprep.subr.bf16.mxu1 %v5074_v11 }
 0x20f   :  { %4644 = vmatprep.subr.bf16.mxu0 %v5076_v37 }
 0x211   :  { %4665 = vmatpush3.bf16.msra.mxu1 %v5075_v28 }
 0x212   :  { %4645 = vmatpush3.bf16.msra.mxu0 %v5077_v27  ;;  %4666 = vmatprep.subr.bf16.mxu1 %v5078_v30 }
 0x213   :  { %4646 = vmatprep.subr.bf16.mxu0 %v5080_v29 }
 0x215   :  { %4667 = vmatpush3.bf16.msra.mxu1 %v5079_v31 }
 0x216   :  { %4647 = vmatpush3.bf16.msra.mxu0 %v5081_v38  ;;  %4668 = vmatprep.subr.bf16.mxu1 %v5082_v33 }
 0x217   :  { %4676 = vmatprep.subr.bf16.mxu0 %v5084_v20 }
 0x219   :  { %3533 = vmatmul.mubr.bf16.vlgmr.msra.gmra.mrb[40].mxu0 %v2596_v53  ;;  %4669 = vmatpush3.bf16.msra.mxu1 %v5083_v41 }
 0x21a   :  { %4677 = vmatpush3.bf16.msra.mxu0 %v5085_v39  ;;  %3804 = vmatprep.mubr.bf16.mxu0 %v2601_v55 }
 0x21b   :  { %4678 = vmatprep.subr.bf16.mxu0 %v5088_v40  ;;  %4698 = vmatprep.subr.bf16.mxu1 %v5086_v9 }
 0x21c   :  { %3669 = vmatmul.mubr.bf16.vlgmr.msra.gmra.mrb[40].mxu1 %v2598_v50 }
 0x21d   :  { %4699 = vmatpush3.bf16.msra.mxu1 %v5087_v46  ;;  %3940 = vmatprep.mubr.bf16.mxu1 %v2603_v52 }
 0x21e   :  { %4679 = vmatpush3.bf16.msra.mxu0 %v5089_v2  ;;  %4700 = vmatprep.subr.bf16.mxu1 %v5090_v60 }
 0x21f   :  { %4680 = vmatprep.subr.bf16.mxu0 %v5092_v49 }
 0x221   :  { %4701 = vmatpush3.bf16.msra.mxu1 %v5091_v15 }
 0x222   :  { %4681 = vmatpush3.bf16.msra.mxu0 %v5093_v13  ;;  %4702 = vmatprep.subr.bf16.mxu1 %v5094_v17 }
 0x223   :  { %4682 = vmatprep.subr.bf16.mxu0 %v5096_v47 }
 0x225   :  { %4703 = vmatpush3.bf16.msra.mxu1 %v5095_v19 }
 0x226   :  { %4683 = vmatpush3.bf16.msra.mxu0 %v5097_v1  ;;  %4704 = vmatprep.subr.bf16.mxu1 %v5098_v7 }
 0x227   :  { %4684 = vmatprep.subr.bf16.mxu0 %v5100_v56 }
 0x229   :  { %4705 = vmatpush3.bf16.msra.mxu1 %v5099_v51 }
 0x22a   :  { %4685 = vmatpush3.bf16.msra.mxu0 %v5101_v42  ;;  %4706 = vmatprep.subr.bf16.mxu1 %v5102_v57 }
 0x22b   :  { %4686 = vmatprep.subr.bf16.mxu0 %v5104_v6 }
 0x22d   :  { %4707 = vmatpush3.bf16.msra.mxu1 %v5103_v59 }
 0x22e   :  { %4687 = vmatpush3.bf16.msra.mxu0 %v5105_v58  ;;  %4708 = vmatprep.subr.bf16.mxu1 %v5106_v62 }
 0x22f   :  { %4688 = vmatprep.subr.bf16.mxu0 %v5108_v61 }
 0x231   :  { %4709 = vmatpush3.bf16.msra.mxu1 %v5107_v0 }
 0x232   :  { %4689 = vmatpush3.bf16.msra.mxu0 %v5109_v63  ;;  %4710 = vmatprep.subr.bf16.mxu1 %v5110_v44 }
 0x233   :  { %4690 = vmatprep.subr.bf16.mxu0 %v5112_v4 }
 0x235   :  { %4711 = vmatpush3.bf16.msra.mxu1 %v5111_v18 }
 0x236   :  { %4691 = vmatpush3.bf16.msra.mxu0 %v5113_v8  ;;  %4712 = vmatprep.subr.bf16.mxu1 %v5114_v35 }
 0x237   :  { %4748 = vmatprep.subr.bf16.mxu0 %v5117_v5 }
 0x239   :  { %3805 = vmatmul.mubr.bf16.vlgmr.msra.gmra.mrb[44].mxu0 %v2600_v45  ;;  %4713 = vmatpush3.bf16.msra.mxu1 %v5115_v36 }
 0x23a   :  { %4750 = vmatpush3.bf16.msra.mxu0 %v4749_v34  ;;  %4745 = vmatprep.mubr.msk.f32.mxu0 %vm5118_vm2, %v5119_v25 }
 0x23b   :  { %4751 = vmatprep.subr.bf16.mxu0 %v5117_v5 }
 0x23c   :  { %3941 = vmatmul.mubr.bf16.vlgmr.msra.gmra.mrb[44].mxu1 %v2602_v3 }
 0x23e   :  { %4753 = vmatpush3.bf16.msra.mxu0 %v4752_v14 }
 0x23f   :  { %4754 = vmatprep.subr.bf16.mxu0 %v5117_v5 }
 0x242   :  { %4756 = vmatpush3.bf16.msra.mxu0 %v4755_v22 }
 0x243   :  { %4757 = vmatprep.subr.bf16.mxu0 %v5117_v5 }
 0x246   :  { %4759 = vmatpush3.bf16.msra.mxu0 %v4758_v16 }
 0x2ac   :  { %v4560_v32 = vpop.f32.mrb[32].mxu0 }
 0x2ad   :  { %v4561_v54 = vpop.f32.mrb[33].mxu0 }
 0x2ae   :  { %v4562_v37 = vadd.f32 %v4561_v54, %v4560_v32  ;;  %v4563_v11 = vpop.f32.mrb[34].mxu0 }
 0x2af   :  { %v4564_v27 = vpop.f32.mrb[35].mxu0  ;;  %v4582_v28 = vpop.f32.mrb[32].mxu1 }
 0x2b0   :  { %v4583_v29 = vpop.f32.mrb[33].mxu1  ;;  %v3949_v20 = vsel %vm3948_vm3, %v4562_v37, 0.0 }
 0x2b1   :  { %v4584_v30 = vadd.f32 %v4583_v29, %v4582_v28  ;;  %v4585_v38 = vpop.f32.mrb[34].mxu1 }
 0x2b2   :  { %v4586_v31 = vpop.f32.mrb[35].mxu1 }
 0x2b3   :  { %v3950_v33 = vsel %vm3948_vm3, %v4584_v30, 0.0 }
 0x2b4   :  { %v3951_v39 = vadd.f32 %v3950_v33, %v3949_v20 }
 0x2cc   :  { %v4604_v53 = vpop.f32.mrb[36].mxu0 }
 0x2cd   :  { %v4605_v41 = vpop.f32.mrb[37].mxu0 }
 0x2ce   :  { %v4606_v40 = vadd.f32 %v4605_v41, %v4604_v53  ;;  %v4607_v55 = vpop.f32.mrb[38].mxu0 }
 0x2cf   :  { %v4608_v9 = vpop.f32.mrb[39].mxu0  ;;  %v4626_v50 = vpop.f32.mrb[36].mxu1 }
 0x2d0   :  { %v3952_v2 = vsel %vm3948_vm3, %v4606_v40, 0.0  ;;  %v4627_v60 = vpop.f32.mrb[37].mxu1 }
 0x2d1   :  { %v3953_v46 = vadd.f32 %v3952_v2, %v3951_v39  ;;  %v4628_v49 = vadd.f32 %v4627_v60, %v4626_v50  ;;  %v4629_v52 = vpop.f32.mrb[38].mxu1 }
 0x2d2   :  { %v4630_v13 = vpop.f32.mrb[39].mxu1 }
 0x2d3   :  { %v3954_v15 = vsel %vm3948_vm3, %v4628_v49, 0.0 }
 0x2d4   :  { %v3955_v47 = vadd.f32 %v3954_v15, %v3953_v46 }
 0x2ec   :  { %v4648_v17 = vpop.f32.mrb[40].mxu0 }
 0x2ed   :  { %v4649_v1 = vpop.f32.mrb[41].mxu0 }
 0x2ee   :  { %v4650_v19 = vadd.f32 %v4649_v1, %v4648_v17  ;;  %v4651_v56 = vpop.f32.mrb[42].mxu0 }
 0x2ef   :  { %v4652_v7 = vpop.f32.mrb[43].mxu0  ;;  %v4670_v6 = vpop.f32.mrb[40].mxu1 }
 0x2f0   :  { %v3956_v42 = vsel %vm3948_vm3, %v4650_v19, 0.0  ;;  %v4671_v57 = vpop.f32.mrb[41].mxu1 }
 0x2f1   :  { %v3957_v51 = vadd.f32 %v3956_v42, %v3955_v47  ;;  %v4672_v58 = vadd.f32 %v4671_v57, %v4670_v6  ;;  %v4673_v59 = vpop.f32.mrb[42].mxu1 }
 0x2f2   :  { %v4674_v61 = vpop.f32.mrb[43].mxu1 }
 0x2f3   :  { %v3958_v62 = vsel %vm3948_vm3, %v4672_v58, 0.0 }
 0x2f4   :  { %v3959_v63 = vadd.f32 %v3958_v62, %v3957_v51 }
 0x30c   :  { %v4692_v0 = vpop.f32.mrb[44].mxu0 }
 0x30d   :  { %v4693_v4 = vpop.f32.mrb[45].mxu0 }
 0x30e   :  { %v4694_v44 = vadd.f32 %v4693_v4, %v4692_v0  ;;  %v4695_v8 = vpop.f32.mrb[46].mxu0 }
 0x30f   :  { %v4696_v18 = vpop.f32.mrb[47].mxu0  ;;  %v4714_v36 = vpop.f32.mrb[44].mxu1 }
 0x310   :  { %v3960_v35 = vsel %vm3948_vm3, %v4694_v44, 0.0  ;;  %v4715_v3 = vpop.f32.mrb[45].mxu1 }
 0x311   :  { %v3961_v45 = vadd.f32 %v3960_v35, %v3959_v63  ;;  %v4716_v5 = vadd.f32 %v4715_v3, %v4714_v36  ;;  %v4717_v26 = vpop.f32.mrb[46].mxu1 }
 0x312   :  { %v4718_v43 = vpop.f32.mrb[47].mxu1 }
 0x313   :  { %v3962_v34 = vsel %vm3948_vm3, %v4716_v5, 0.0 }
 0x314   :  { %v3963_v48 = vadd.f32 %v3962_v34, %v3961_v45 }
 0x316   :  { %v3971_v14 = vadd.f32 %v4541_v12, %v3963_v48 }
 0x318   :  { %4746 = vmatmul.mubr.msk.f32.vlgmr.msra.gmra.mrb[48].mxu0 %vm3948_vm3, %v3971_v14 }
 0x3eb   :  { %v4056_v10 = vpop.f32.mrb[48].mxu0 }
 0x3ec   :  { %v4057_v22 = vadd.f32 %v4542_v21, %v4056_v10  ;;  %v4747_v23 = vpop.f32.mrb[49].mxu0 }
 0x3ee   :  { %4060 = vst [vmem:[%s6552_s7] sm:$0xff] %v4057_v22 }

</bundles_post_ra>
